<compile_context>
chip_gen: v7x
topology: tpu7x:2x2x1
jax: 0.10.0
libtpu: 0.0.40
codegen_flags: <defaults>
</compile_context>

<pallas_src>
import math
from functools import partial

import jax
import jax.numpy as jnp
from jax.experimental import pallas as pl
from jax.experimental.pallas import tpu as pltpu

HI = jax.lax.Precision.HIGHEST


def _mm(a, b):
    """Single-pass bf16 MXU matmul with f32 accumulation."""
    return jnp.dot(a.astype(jnp.bfloat16), b.astype(jnp.bfloat16),
                   preferred_element_type=jnp.float32)


def _mha_v3b_kernel(
    x_ref, e_ref, msel_ref, mselt_ref,
    wqx_ref, bqx_ref, wke_ref, bke_ref, wve_ref, bve_ref,   # edge->node projections
    wqe_ref, bqe_ref, wkx_ref, bkx_ref, wvx_ref, bvx_ref,   # node->edge projections
    wox_ref, box_ref, woe_ref, boe_ref,                     # output projections
    xo_ref, eo_ref,
    *, N, d, H, TI,
):
    scale = 1.0 / math.sqrt(d // H)

    # ---- load activations -------------------------------------------------
    x_all = x_ref[...]                          # [N, d]   (K/V for the "j" endpoint)
    if TI == N:
        x_t = x_all                             # single row-tile: no dynamic slice
    else:
        off = pl.multiple_of(pl.program_id(1) * TI, TI)
        x_t = x_ref[pl.ds(off, TI), :]          # [TI, d]  rows of the current i-tile
    e_t = e_ref[...].reshape(TI * N, d)         # [TI*N, d] edges: rows i in tile, all j

    msel = msel_ref[...]                        # [d, H] bf16 0/1 head-selector
    mselt = mselt_ref[...]                      # [H, d] bf16

    # ---- Q/K/V projections (bf16 MXU, f32 accumulate) ----------------------
    kx_all = _mm(x_all, wkx_ref[...]) + bkx_ref[...]        # [N, d]
    vx_all = _mm(x_all, wvx_ref[...]) + bvx_ref[...]        # [N, d]
    qx_t = _mm(x_t, wqx_ref[...]) + bqx_ref[...]            # [TI, d]
    if TI == N:
        kx_t, vx_t = kx_all, vx_all
    else:
        kx_t = _mm(x_t, wkx_ref[...]) + bkx_ref[...]        # [TI, d]
        vx_t = _mm(x_t, wvx_ref[...]) + bvx_ref[...]        # [TI, d]

    ke = _mm(e_t, wke_ref[...]) + bke_ref[...]              # [TI*N, d]
    ve = _mm(e_t, wve_ref[...]) + bve_ref[...]              # [TI*N, d]
    qe = _mm(e_t, wqe_ref[...]) + bqe_ref[...]              # [TI*N, d]
    ke3 = ke.reshape(TI, N, d)
    ve3 = ve.reshape(TI, N, d)
    qe3 = qe.reshape(TI, N, d)

    # ======================================================================
    # edge -> node: node i attends (softmax over j) to its edge row e[i, :].
    # per-head scores = lane-dense elementwise product, then the dh-reduction
    # is done on the MXU with the [d, H] head-selector matrix.
    # ======================================================================
    tq = (qx_t * scale)[:, None, :] * ke3                               # [TI, N, d]
    s = _mm(tq.reshape(TI * N, d), msel).reshape(TI, N, H)              # [TI, N, H]
    s_max = jnp.max(s, axis=1, keepdims=True)
    p = jnp.exp(s - s_max)
    l = jnp.sum(p, axis=1, keepdims=True)
    att = p * pl.reciprocal(l, approx=True)                             # softmax over j
    att_e = _mm(att.reshape(TI * N, H), mselt).reshape(TI, N, d)        # prob broadcast to head block
    x_ctx = jnp.sum(att_e * ve3, axis=1)                                # [TI, d] (heads packed)

    # ======================================================================
    # node -> edge: edge (i, j) 2-way softmax over its endpoint nodes i and j.
    # ======================================================================
    ti = qe3 * (kx_t * scale)[:, None, :]                               # score vs endpoint i
    tj = qe3 * (kx_all * scale)[None, :, :]                             # score vs endpoint j
    si = _mm(ti.reshape(TI * N, d), msel).reshape(TI, N, H)
    sj = _mm(tj.reshape(TI * N, d), msel).reshape(TI, N, H)
    m2 = jnp.maximum(si, sj)
    ai = jnp.exp(si - m2)
    aj = jnp.exp(sj - m2)
    inv = pl.reciprocal(ai + aj, approx=True)
    ai = ai * inv
    aj = aj * inv
    ai_e = _mm(ai.reshape(TI * N, H), mselt).reshape(TI, N, d)
    aj_e = _mm(aj.reshape(TI * N, H), mselt).reshape(TI, N, d)
    e_ctx = ai_e * vx_t[:, None, :] + aj_e * vx_all[None, :, :]         # [TI, N, d]

    # ---- output projections (heads were never split -> no concatenate) ----
    x_out = _mm(x_ctx, wox_ref[...]) + box_ref[...]                     # [TI, d]
    e_out = _mm(e_ctx.reshape(TI * N, d), woe_ref[...]) + boe_ref[...]  # [TI*N, d]

    xo_ref[...] = x_out
    eo_ref[...] = e_out.reshape(TI, N, d)


def _pick_row_tile(N, d, budget_bytes=32 * 1024 * 1024):
    """Largest row tile TI (divisor of N, multiple of 8 unless TI == N) whose
    per-tile working set (~12 f32 copies of a [TI, N, d] slab) fits the budget."""
    bytes_per_row = 12 * N * d * 4
    cap = max(1, budget_bytes // max(bytes_per_row, 1))
    if cap >= N:
        return N
    t = (cap // 8) * 8
    while t >= 8:
        if N % t == 0:
            return t
        t -= 8
    for t in range(8, N, 8):          # smallest multiple-of-8 divisor (over budget but < N)
        if N % t == 0:
            return t
    return N


def mha_v3b_pallas(x, e, p, num_heads):
    B, N, d = x.shape
    assert e.shape == (B, N, N, d)
    assert d % num_heads == 0, "hidden size must be divisible by num_heads"
    H = num_heads
    dh = d // H

    TI = _pick_row_tile(N, d)
    nI = N // TI
    kern = partial(_mha_v3b_kernel, N=N, d=d, H=H, TI=TI)

    # 0/1 block-diagonal head-selector: feature c belongs to head c // dh.
    head_of_feat = jnp.arange(d, dtype=jnp.int32) // dh
    msel = (head_of_feat[:, None] == jnp.arange(H, dtype=jnp.int32)[None, :]).astype(jnp.bfloat16)
    mselt = msel.T

    x_spec = pl.BlockSpec((None, N, d), lambda b, i: (b, 0, 0))
    e_spec = pl.BlockSpec((None, TI, N, d), lambda b, i: (b, i, 0, 0))
    msel_spec = pl.BlockSpec((d, H), lambda b, i: (0, 0))
    mselt_spec = pl.BlockSpec((H, d), lambda b, i: (0, 0))
    w_spec = pl.BlockSpec((d, d), lambda b, i: (0, 0))
    b_spec = pl.BlockSpec((1, d), lambda b, i: (0, 0))

    names = ["qx", "ke", "ve", "qe", "kx", "vx", "ox", "oe"]
    flat_params = []
    param_specs = []
    for n in names:
        flat_params += [p["w" + n].astype(jnp.bfloat16),
                        p["b" + n].reshape(1, d).astype(jnp.float32)]
        param_specs += [w_spec, b_spec]

    grid_spec = pltpu.PrefetchScalarGridSpec(
        num_scalar_prefetch=0,
        grid=(B, nI),
        in_specs=[x_spec, e_spec, msel_spec, mselt_spec] + param_specs,
        out_specs=(
            pl.BlockSpec((None, TI, d), lambda b, i: (b, i, 0)),
            pl.BlockSpec((None, TI, N, d), lambda b, i: (b, i, 0, 0)),
        ),
    )

    # explicit VMEM budget sized to the chosen tile (fits v7x's 64 MiB physical VMEM)
    tile_bytes = 12 * TI * N * d * 4 + 20 * d * d * 4
    vmem_limit = int(min(max(2 * tile_bytes, 32 * 1024 * 1024), 56 * 1024 * 1024))

    return pl.pallas_call(
        kern,
        out_shape=(
            jax.ShapeDtypeStruct((B, N, d), jnp.float32),
            jax.ShapeDtypeStruct((B, N, N, d), jnp.float32),
        ),
        grid_spec=grid_spec,
        compiler_params=pltpu.CompilerParams(
            dimension_semantics=("parallel", "parallel"),
            vmem_limit_bytes=vmem_limit,
        ),
    )(x, e, msel, mselt, *flat_params)


def mha_v3b_ref(x, e, p, H):
    """Pure-JAX f32 HIGHEST-precision reference for verification."""
    B, N, d = x.shape
    dh = d // H
    scale = 1.0 / math.sqrt(dh)

    def lin(z, w, b):
        return jnp.einsum("...c,cd->...d", z, w, precision=HI) + b

    qx = lin(x, p["wqx"], p["bqx"]).reshape(B, N, H, dh)
    ke = lin(e, p["wke"], p["bke"]).reshape(B, N, N, H, dh)
    ve = lin(e, p["wve"], p["bve"]).reshape(B, N, N, H, dh)
    s = jnp.einsum("bihd,bijhd->bijh", qx, ke, precision=HI) * scale
    att = jax.nn.softmax(s, axis=2)
    x_cat = jnp.einsum("bijh,bijhd->bihd", att, ve, precision=HI).reshape(B, N, d)

    qe = lin(e, p["wqe"], p["bqe"]).reshape(B, N, N, H, dh)
    kx = lin(x, p["wkx"], p["bkx"]).reshape(B, N, H, dh)
    vx = lin(x, p["wvx"], p["bvx"]).reshape(B, N, H, dh)
    si = jnp.einsum("bijhd,bihd->bijh", qe, kx, precision=HI) * scale
    sj = jnp.einsum("bijhd,bjhd->bijh", qe, kx, precision=HI) * scale
    a = jax.nn.softmax(jnp.stack([si, sj], axis=-1), axis=-1)
    e_cat = (a[..., 0:1] * vx[:, :, None, :, :] + a[..., 1:2] * vx[:, None, :, :, :]).reshape(B, N, N, d)

    x_out = lin(x_cat, p["wox"], p["box"])
    e_out = lin(e_cat, p["woe"], p["boe"])
    return x_out, e_out


def make_params(key, d):
    """Deterministic synthetic parameters (per-head Q/K/V stacked into [d, d])."""
    names = ["qx", "ke", "ve", "qe", "kx", "vx", "ox", "oe"]
    keys = jax.random.split(key, 2 * len(names))
    p = {}
    for i, n in enumerate(names):
        p["w" + n] = jax.random.normal(keys[2 * i], (d, d), jnp.float32) / math.sqrt(d)
        p["b" + n] = jax.random.normal(keys[2 * i + 1], (d,), jnp.float32) * 0.02
    return p


if __name__ == "__main__":
    B, N, d, H = 2, 8, 32, 4   # batch=2, nodes=8, hidden=32, 4 heads (d_head=8)
    key = jax.random.PRNGKey(0)
    kx_key, ke_key, kp_key = jax.random.split(key, 3)
    x = jax.random.normal(kx_key, (B, N, d), jnp.float32)
    e = jax.random.normal(ke_key, (B, N, N, d), jnp.float32)
    params = make_params(kp_key, d)

    x_out, e_out = mha_v3b_pallas(x, e, params, H)
    jax.block_until_ready((x_out, e_out))

    x_gold, e_gold = mha_v3b_ref(x, e, params, H)
    # kernel runs single-pass bf16 matmuls (f32 accumulation) -> bf16-level tolerance
    assert jnp.allclose(x_out, x_gold, atol=5e-2, rtol=5e-2), "x mismatch"
    assert jnp.allclose(e_out, e_gold, atol=5e-2, rtol=5e-2), "e mismatch"

    print("KERNEL_OK")
</pallas_src>

<mosaic_0001>
module attributes {stable_mosaic.version = 11 : i64} {
  func.func @_mha_v3b_kernel(%arg0: i32, %arg1: i32, %arg2: memref<1x8x32xf32, #tpu.memory_space<vmem>>, %arg3: memref<1x8x8x32xf32, #tpu.memory_space<vmem>>, %arg4: memref<32x4xbf16, #tpu.memory_space<vmem>>, %arg5: memref<4x32xbf16, #tpu.memory_space<vmem>>, %arg6: memref<32x32xbf16, #tpu.memory_space<vmem>>, %arg7: memref<1x32xf32, #tpu.memory_space<vmem>>, %arg8: memref<32x32xbf16, #tpu.memory_space<vmem>>, %arg9: memref<1x32xf32, #tpu.memory_space<vmem>>, %arg10: memref<32x32xbf16, #tpu.memory_space<vmem>>, %arg11: memref<1x32xf32, #tpu.memory_space<vmem>>, %arg12: memref<32x32xbf16, #tpu.memory_space<vmem>>, %arg13: memref<1x32xf32, #tpu.memory_space<vmem>>, %arg14: memref<32x32xbf16, #tpu.memory_space<vmem>>, %arg15: memref<1x32xf32, #tpu.memory_space<vmem>>, %arg16: memref<32x32xbf16, #tpu.memory_space<vmem>>, %arg17: memref<1x32xf32, #tpu.memory_space<vmem>>, %arg18: memref<32x32xbf16, #tpu.memory_space<vmem>>, %arg19: memref<1x32xf32, #tpu.memory_space<vmem>>, %arg20: memref<32x32xbf16, #tpu.memory_space<vmem>>, %arg21: memref<1x32xf32, #tpu.memory_space<vmem>>, %arg22: memref<1x8x32xf32, #tpu.memory_space<vmem>>, %arg23: memref<1x8x8x32xf32, #tpu.memory_space<vmem>>) attributes {dimension_semantics = [#tpu.dimension_semantics<parallel>, #tpu.dimension_semantics<parallel>], iteration_bounds = array<i64: 2, 1>, scalar_prefetch = 0 : i64, scratch_operands = 0 : i64, tpu.core_type = #tpu.core_type<tc>, window_params = [{transform_indices = @transform_0, window_bounds = array<i64: 1, 8, 32>}, {transform_indices = @transform_1, window_bounds = array<i64: 1, 8, 8, 32>}, {pipeline_mode = #tpu.pipeline_mode<synchronous>, transform_indices = @transform_2, window_bounds = array<i64: 32, 4>}, {pipeline_mode = #tpu.pipeline_mode<synchronous>, transform_indices = @transform_3, window_bounds = array<i64: 4, 32>}, {pipeline_mode = #tpu.pipeline_mode<synchronous>, transform_indices = @transform_4, window_bounds = array<i64: 32, 32>}, {pipeline_mode = #tpu.pipeline_mode<synchronous>, transform_indices = @transform_5, window_bounds = array<i64: 1, 32>}, {pipeline_mode = #tpu.pipeline_mode<synchronous>, transform_indices = @transform_6, window_bounds = array<i64: 32, 32>}, {pipeline_mode = #tpu.pipeline_mode<synchronous>, transform_indices = @transform_7, window_bounds = array<i64: 1, 32>}, {pipeline_mode = #tpu.pipeline_mode<synchronous>, transform_indices = @transform_8, window_bounds = array<i64: 32, 32>}, {pipeline_mode = #tpu.pipeline_mode<synchronous>, transform_indices = @transform_9, window_bounds = array<i64: 1, 32>}, {pipeline_mode = #tpu.pipeline_mode<synchronous>, transform_indices = @transform_10, window_bounds = array<i64: 32, 32>}, {pipeline_mode = #tpu.pipeline_mode<synchronous>, transform_indices = @transform_11, window_bounds = array<i64: 1, 32>}, {pipeline_mode = #tpu.pipeline_mode<synchronous>, transform_indices = @transform_12, window_bounds = array<i64: 32, 32>}, {pipeline_mode = #tpu.pipeline_mode<synchronous>, transform_indices = @transform_13, window_bounds = array<i64: 1, 32>}, {pipeline_mode = #tpu.pipeline_mode<synchronous>, transform_indices = @transform_14, window_bounds = array<i64: 32, 32>}, {pipeline_mode = #tpu.pipeline_mode<synchronous>, transform_indices = @transform_15, window_bounds = array<i64: 1, 32>}, {pipeline_mode = #tpu.pipeline_mode<synchronous>, transform_indices = @transform_16, window_bounds = array<i64: 32, 32>}, {pipeline_mode = #tpu.pipeline_mode<synchronous>, transform_indices = @transform_17, window_bounds = array<i64: 1, 32>}, {pipeline_mode = #tpu.pipeline_mode<synchronous>, transform_indices = @transform_18, window_bounds = array<i64: 32, 32>}, {pipeline_mode = #tpu.pipeline_mode<synchronous>, transform_indices = @transform_19, window_bounds = array<i64: 1, 32>}, {transform_indices = @transform_20, window_bounds = array<i64: 1, 8, 32>}, {transform_indices = @transform_21, window_bounds = array<i64: 1, 8, 8, 32>}]} {
    %c0 = arith.constant 0 : index
    %c0_0 = arith.constant 0 : index
    %c0_1 = arith.constant 0 : index
    %0 = vector.load %arg2[%c0, %c0_0, %c0_1] : memref<1x8x32xf32, #tpu.memory_space<vmem>>, vector<1x8x32xf32>
    %1 = vector.shape_cast %0 : vector<1x8x32xf32> to vector<8x32xf32>
    %c0_2 = arith.constant 0 : index
    %c0_3 = arith.constant 0 : index
    %c0_4 = arith.constant 0 : index
    %c0_5 = arith.constant 0 : index
    %2 = vector.load %arg3[%c0_2, %c0_3, %c0_4, %c0_5] : memref<1x8x8x32xf32, #tpu.memory_space<vmem>>, vector<1x8x8x32xf32>
    %3 = vector.shape_cast %2 : vector<1x8x8x32xf32> to vector<8x8x32xf32>
    %4 = vector.shape_cast %3 : vector<8x8x32xf32> to vector<64x32xf32>
    %c0_6 = arith.constant 0 : index
    %c0_7 = arith.constant 0 : index
    %5 = vector.load %arg4[%c0_6, %c0_7] : memref<32x4xbf16, #tpu.memory_space<vmem>>, vector<32x4xbf16>
    %c0_8 = arith.constant 0 : index
    %c0_9 = arith.constant 0 : index
    %6 = vector.load %arg5[%c0_8, %c0_9] : memref<4x32xbf16, #tpu.memory_space<vmem>>, vector<4x32xbf16>
    %c0_10 = arith.constant 0 : index
    %c0_11 = arith.constant 0 : index
    %7 = vector.load %arg14[%c0_10, %c0_11] : memref<32x32xbf16, #tpu.memory_space<vmem>>, vector<32x32xbf16>
    %8 = arith.truncf %1 : vector<8x32xf32> to vector<8x32xbf16>
    %cst = arith.constant dense<0.000000e+00> : vector<8x32xf32>
    %9 = tpu.matmul %8, %7, %cst {dimension_numbers = #tpu.dot_dimension_numbers<[1], [0], [0], [1], [0, 0, 1, 1], [], []>} : vector<8x32xbf16>, vector<32x32xbf16>, vector<8x32xf32> -> vector<8x32xf32>
    %c0_12 = arith.constant 0 : index
    %c0_13 = arith.constant 0 : index
    %10 = vector.load %arg15[%c0_12, %c0_13] : memref<1x32xf32, #tpu.memory_space<vmem>>, vector<1x32xf32>
    %11 = vector.broadcast %10 : vector<1x32xf32> to vector<8x32xf32>
    %12 = arith.addf %9, %11 : vector<8x32xf32>
    %c0_14 = arith.constant 0 : index
    %c0_15 = arith.constant 0 : index
    %13 = vector.load %arg16[%c0_14, %c0_15] : memref<32x32xbf16, #tpu.memory_space<vmem>>, vector<32x32xbf16>
    %14 = arith.truncf %1 : vector<8x32xf32> to vector<8x32xbf16>
    %cst_16 = arith.constant dense<0.000000e+00> : vector<8x32xf32>
    %15 = tpu.matmul %14, %13, %cst_16 {dimension_numbers = #tpu.dot_dimension_numbers<[1], [0], [0], [1], [0, 0, 1, 1], [], []>} : vector<8x32xbf16>, vector<32x32xbf16>, vector<8x32xf32> -> vector<8x32xf32>
    %c0_17 = arith.constant 0 : index
    %c0_18 = arith.constant 0 : index
    %16 = vector.load %arg17[%c0_17, %c0_18] : memref<1x32xf32, #tpu.memory_space<vmem>>, vector<1x32xf32>
    %17 = vector.broadcast %16 : vector<1x32xf32> to vector<8x32xf32>
    %18 = arith.addf %15, %17 : vector<8x32xf32>
    %c0_19 = arith.constant 0 : index
    %c0_20 = arith.constant 0 : index
    %19 = vector.load %arg6[%c0_19, %c0_20] : memref<32x32xbf16, #tpu.memory_space<vmem>>, vector<32x32xbf16>
    %20 = arith.truncf %1 : vector<8x32xf32> to vector<8x32xbf16>
    %cst_21 = arith.constant dense<0.000000e+00> : vector<8x32xf32>
    %21 = tpu.matmul %20, %19, %cst_21 {dimension_numbers = #tpu.dot_dimension_numbers<[1], [0], [0], [1], [0, 0, 1, 1], [], []>} : vector<8x32xbf16>, vector<32x32xbf16>, vector<8x32xf32> -> vector<8x32xf32>
    %c0_22 = arith.constant 0 : index
    %c0_23 = arith.constant 0 : index
    %22 = vector.load %arg7[%c0_22, %c0_23] : memref<1x32xf32, #tpu.memory_space<vmem>>, vector<1x32xf32>
    %23 = vector.broadcast %22 : vector<1x32xf32> to vector<8x32xf32>
    %24 = arith.addf %21, %23 : vector<8x32xf32>
    %c0_24 = arith.constant 0 : index
    %c0_25 = arith.constant 0 : index
    %25 = vector.load %arg8[%c0_24, %c0_25] : memref<32x32xbf16, #tpu.memory_space<vmem>>, vector<32x32xbf16>
    %26 = arith.truncf %4 : vector<64x32xf32> to vector<64x32xbf16>
    %cst_26 = arith.constant dense<0.000000e+00> : vector<64x32xf32>
    %27 = tpu.matmul %26, %25, %cst_26 {dimension_numbers = #tpu.dot_dimension_numbers<[1], [0], [0], [1], [0, 0, 1, 1], [], []>} : vector<64x32xbf16>, vector<32x32xbf16>, vector<64x32xf32> -> vector<64x32xf32>
    %c0_27 = arith.constant 0 : index
    %c0_28 = arith.constant 0 : index
    %28 = vector.load %arg9[%c0_27, %c0_28] : memref<1x32xf32, #tpu.memory_space<vmem>>, vector<1x32xf32>
    %29 = vector.broadcast %28 : vector<1x32xf32> to vector<64x32xf32>
    %30 = arith.addf %27, %29 : vector<64x32xf32>
    %c0_29 = arith.constant 0 : index
    %c0_30 = arith.constant 0 : index
    %31 = vector.load %arg10[%c0_29, %c0_30] : memref<32x32xbf16, #tpu.memory_space<vmem>>, vector<32x32xbf16>
    %32 = arith.truncf %4 : vector<64x32xf32> to vector<64x32xbf16>
    %cst_31 = arith.constant dense<0.000000e+00> : vector<64x32xf32>
    %33 = tpu.matmul %32, %31, %cst_31 {dimension_numbers = #tpu.dot_dimension_numbers<[1], [0], [0], [1], [0, 0, 1, 1], [], []>} : vector<64x32xbf16>, vector<32x32xbf16>, vector<64x32xf32> -> vector<64x32xf32>
    %c0_32 = arith.constant 0 : index
    %c0_33 = arith.constant 0 : index
    %34 = vector.load %arg11[%c0_32, %c0_33] : memref<1x32xf32, #tpu.memory_space<vmem>>, vector<1x32xf32>
    %35 = vector.broadcast %34 : vector<1x32xf32> to vector<64x32xf32>
    %36 = arith.addf %33, %35 : vector<64x32xf32>
    %c0_34 = arith.constant 0 : index
    %c0_35 = arith.constant 0 : index
    %37 = vector.load %arg12[%c0_34, %c0_35] : memref<32x32xbf16, #tpu.memory_space<vmem>>, vector<32x32xbf16>
    %38 = arith.truncf %4 : vector<64x32xf32> to vector<64x32xbf16>
    %cst_36 = arith.constant dense<0.000000e+00> : vector<64x32xf32>
    %39 = tpu.matmul %38, %37, %cst_36 {dimension_numbers = #tpu.dot_dimension_numbers<[1], [0], [0], [1], [0, 0, 1, 1], [], []>} : vector<64x32xbf16>, vector<32x32xbf16>, vector<64x32xf32> -> vector<64x32xf32>
    %c0_37 = arith.constant 0 : index
    %c0_38 = arith.constant 0 : index
    %40 = vector.load %arg13[%c0_37, %c0_38] : memref<1x32xf32, #tpu.memory_space<vmem>>, vector<1x32xf32>
    %41 = vector.broadcast %40 : vector<1x32xf32> to vector<64x32xf32>
    %42 = arith.addf %39, %41 : vector<64x32xf32>
    %43 = vector.shape_cast %30 : vector<64x32xf32> to vector<8x8x32xf32>
    %44 = vector.shape_cast %36 : vector<64x32xf32> to vector<8x8x32xf32>
    %45 = vector.shape_cast %42 : vector<64x32xf32> to vector<8x8x32xf32>
    %cst_39 = arith.constant 0.353553385 : f32
    %46 = vector.broadcast %cst_39 : f32 to vector<8x32xf32>
    %47 = arith.mulf %24, %46 : vector<8x32xf32>
    %48 = vector.shape_cast %47 : vector<8x32xf32> to vector<8x1x32xf32>
    %49 = vector.broadcast %48 : vector<8x1x32xf32> to vector<8x8x32xf32>
    %50 = arith.mulf %49, %43 : vector<8x8x32xf32>
    %51 = vector.shape_cast %50 : vector<8x8x32xf32> to vector<64x32xf32>
    %52 = arith.truncf %51 : vector<64x32xf32> to vector<64x32xbf16>
    %cst_40 = arith.constant dense<0.000000e+00> : vector<64x4xf32>
    %53 = tpu.matmul %52, %5, %cst_40 {dimension_numbers = #tpu.dot_dimension_numbers<[1], [0], [0], [1], [0, 0, 1, 1], [], []>} : vector<64x32xbf16>, vector<32x4xbf16>, vector<64x4xf32> -> vector<64x4xf32>
    %54 = vector.shape_cast %53 : vector<64x4xf32> to vector<8x8x4xf32>
    %cst_41 = arith.constant dense<0xFF800000> : vector<8x4xf32>
    %55 = vector.multi_reduction <maximumf>, %54, %cst_41 [1] : vector<8x8x4xf32> to vector<8x4xf32>
    %56 = vector.shape_cast %55 : vector<8x4xf32> to vector<8x1x4xf32>
    %57 = vector.broadcast %56 : vector<8x1x4xf32> to vector<8x8x4xf32>
    %58 = arith.subf %54, %57 : vector<8x8x4xf32>
    %59 = math.exp %58 : vector<8x8x4xf32>
    %cst_42 = arith.constant dense<0.000000e+00> : vector<8x4xf32>
    %60 = vector.multi_reduction <add>, %59, %cst_42 [1] : vector<8x8x4xf32> to vector<8x4xf32>
    %61 = vector.shape_cast %60 : vector<8x4xf32> to vector<8x1x4xf32>
    %62 = tpu.reciprocal %61 {approx = true} : vector<8x1x4xf32> -> vector<8x1x4xf32>
    %63 = vector.broadcast %62 : vector<8x1x4xf32> to vector<8x8x4xf32>
    %64 = arith.mulf %59, %63 : vector<8x8x4xf32>
    %65 = vector.shape_cast %64 : vector<8x8x4xf32> to vector<64x4xf32>
    %66 = arith.truncf %65 : vector<64x4xf32> to vector<64x4xbf16>
    %cst_43 = arith.constant dense<0.000000e+00> : vector<64x32xf32>
    %67 = tpu.matmul %66, %6, %cst_43 {dimension_numbers = #tpu.dot_dimension_numbers<[1], [0], [0], [1], [0, 0, 1, 1], [], []>} : vector<64x4xbf16>, vector<4x32xbf16>, vector<64x32xf32> -> vector<64x32xf32>
    %68 = vector.shape_cast %67 : vector<64x32xf32> to vector<8x8x32xf32>
    %69 = arith.mulf %68, %44 : vector<8x8x32xf32>
    %cst_44 = arith.constant dense<0.000000e+00> : vector<8x32xf32>
    %70 = vector.multi_reduction <add>, %69, %cst_44 [1] : vector<8x8x32xf32> to vector<8x32xf32>
    %cst_45 = arith.constant 0.353553385 : f32
    %71 = vector.broadcast %cst_45 : f32 to vector<8x32xf32>
    %72 = arith.mulf %12, %71 : vector<8x32xf32>
    %73 = vector.shape_cast %72 : vector<8x32xf32> to vector<8x1x32xf32>
    %74 = vector.broadcast %73 : vector<8x1x32xf32> to vector<8x8x32xf32>
    %75 = arith.mulf %45, %74 : vector<8x8x32xf32>
    %cst_46 = arith.constant 0.353553385 : f32
    %76 = vector.broadcast %cst_46 : f32 to vector<8x32xf32>
    %77 = arith.mulf %12, %76 : vector<8x32xf32>
    %78 = vector.shape_cast %77 : vector<8x32xf32> to vector<1x8x32xf32>
    %79 = vector.broadcast %78 : vector<1x8x32xf32> to vector<8x8x32xf32>
    %80 = arith.mulf %45, %79 : vector<8x8x32xf32>
    %81 = vector.shape_cast %75 : vector<8x8x32xf32> to vector<64x32xf32>
    %82 = arith.truncf %81 : vector<64x32xf32> to vector<64x32xbf16>
    %cst_47 = arith.constant dense<0.000000e+00> : vector<64x4xf32>
    %83 = tpu.matmul %82, %5, %cst_47 {dimension_numbers = #tpu.dot_dimension_numbers<[1], [0], [0], [1], [0, 0, 1, 1], [], []>} : vector<64x32xbf16>, vector<32x4xbf16>, vector<64x4xf32> -> vector<64x4xf32>
    %84 = vector.shape_cast %83 : vector<64x4xf32> to vector<8x8x4xf32>
    %85 = vector.shape_cast %80 : vector<8x8x32xf32> to vector<64x32xf32>
    %86 = arith.truncf %85 : vector<64x32xf32> to vector<64x32xbf16>
    %cst_48 = arith.constant dense<0.000000e+00> : vector<64x4xf32>
    %87 = tpu.matmul %86, %5, %cst_48 {dimension_numbers = #tpu.dot_dimension_numbers<[1], [0], [0], [1], [0, 0, 1, 1], [], []>} : vector<64x32xbf16>, vector<32x4xbf16>, vector<64x4xf32> -> vector<64x4xf32>
    %88 = vector.shape_cast %87 : vector<64x4xf32> to vector<8x8x4xf32>
    %89 = arith.maximumf %84, %88 : vector<8x8x4xf32>
    %90 = arith.subf %84, %89 : vector<8x8x4xf32>
    %91 = math.exp %90 : vector<8x8x4xf32>
    %92 = arith.subf %88, %89 : vector<8x8x4xf32>
    %93 = math.exp %92 : vector<8x8x4xf32>
    %94 = arith.addf %91, %93 : vector<8x8x4xf32>
    %95 = tpu.reciprocal %94 {approx = true} : vector<8x8x4xf32> -> vector<8x8x4xf32>
    %96 = arith.mulf %91, %95 : vector<8x8x4xf32>
    %97 = arith.mulf %93, %95 : vector<8x8x4xf32>
    %98 = vector.shape_cast %96 : vector<8x8x4xf32> to vector<64x4xf32>
    %99 = arith.truncf %98 : vector<64x4xf32> to vector<64x4xbf16>
    %cst_49 = arith.constant dense<0.000000e+00> : vector<64x32xf32>
    %100 = tpu.matmul %99, %6, %cst_49 {dimension_numbers = #tpu.dot_dimension_numbers<[1], [0], [0], [1], [0, 0, 1, 1], [], []>} : vector<64x4xbf16>, vector<4x32xbf16>, vector<64x32xf32> -> vector<64x32xf32>
    %101 = vector.shape_cast %100 : vector<64x32xf32> to vector<8x8x32xf32>
    %102 = vector.shape_cast %97 : vector<8x8x4xf32> to vector<64x4xf32>
    %103 = arith.truncf %102 : vector<64x4xf32> to vector<64x4xbf16>
    %cst_50 = arith.constant dense<0.000000e+00> : vector<64x32xf32>
    %104 = tpu.matmul %103, %6, %cst_50 {dimension_numbers = #tpu.dot_dimension_numbers<[1], [0], [0], [1], [0, 0, 1, 1], [], []>} : vector<64x4xbf16>, vector<4x32xbf16>, vector<64x32xf32> -> vector<64x32xf32>
    %105 = vector.shape_cast %104 : vector<64x32xf32> to vector<8x8x32xf32>
    %106 = vector.shape_cast %18 : vector<8x32xf32> to vector<8x1x32xf32>
    %107 = vector.broadcast %106 : vector<8x1x32xf32> to vector<8x8x32xf32>
    %108 = arith.mulf %101, %107 : vector<8x8x32xf32>
    %109 = vector.shape_cast %18 : vector<8x32xf32> to vector<1x8x32xf32>
    %110 = vector.broadcast %109 : vector<1x8x32xf32> to vector<8x8x32xf32>
    %111 = arith.mulf %105, %110 : vector<8x8x32xf32>
    %112 = arith.addf %108, %111 : vector<8x8x32xf32>
    %c0_51 = arith.constant 0 : index
    %c0_52 = arith.constant 0 : index
    %113 = vector.load %arg18[%c0_51, %c0_52] : memref<32x32xbf16, #tpu.memory_space<vmem>>, vector<32x32xbf16>
    %114 = arith.truncf %70 : vector<8x32xf32> to vector<8x32xbf16>
    %cst_53 = arith.constant dense<0.000000e+00> : vector<8x32xf32>
    %115 = tpu.matmul %114, %113, %cst_53 {dimension_numbers = #tpu.dot_dimension_numbers<[1], [0], [0], [1], [0, 0, 1, 1], [], []>} : vector<8x32xbf16>, vector<32x32xbf16>, vector<8x32xf32> -> vector<8x32xf32>
    %c0_54 = arith.constant 0 : index
    %c0_55 = arith.constant 0 : index
    %116 = vector.load %arg19[%c0_54, %c0_55] : memref<1x32xf32, #tpu.memory_space<vmem>>, vector<1x32xf32>
    %117 = vector.broadcast %116 : vector<1x32xf32> to vector<8x32xf32>
    %118 = arith.addf %115, %117 : vector<8x32xf32>
    %119 = vector.shape_cast %112 : vector<8x8x32xf32> to vector<64x32xf32>
    %c0_56 = arith.constant 0 : index
    %c0_57 = arith.constant 0 : index
    %120 = vector.load %arg20[%c0_56, %c0_57] : memref<32x32xbf16, #tpu.memory_space<vmem>>, vector<32x32xbf16>
    %121 = arith.truncf %119 : vector<64x32xf32> to vector<64x32xbf16>
    %cst_58 = arith.constant dense<0.000000e+00> : vector<64x32xf32>
    %122 = tpu.matmul %121, %120, %cst_58 {dimension_numbers = #tpu.dot_dimension_numbers<[1], [0], [0], [1], [0, 0, 1, 1], [], []>} : vector<64x32xbf16>, vector<32x32xbf16>, vector<64x32xf32> -> vector<64x32xf32>
    %c0_59 = arith.constant 0 : index
    %c0_60 = arith.constant 0 : index
    %123 = vector.load %arg21[%c0_59, %c0_60] : memref<1x32xf32, #tpu.memory_space<vmem>>, vector<1x32xf32>
    %124 = vector.broadcast %123 : vector<1x32xf32> to vector<64x32xf32>
    %125 = arith.addf %122, %124 : vector<64x32xf32>
    %c0_61 = arith.constant 0 : index
    %c0_62 = arith.constant 0 : index
    %c0_63 = arith.constant 0 : index
    %126 = vector.load %arg22[%c0_61, %c0_62, %c0_63] : memref<1x8x32xf32, #tpu.memory_space<vmem>>, vector<1x8x32xf32>
    %127 = vector.shape_cast %126 : vector<1x8x32xf32> to vector<8x32xf32>
    %128 = vector.shape_cast %118 : vector<8x32xf32> to vector<1x8x32xf32>
    tpu.vector_store %arg22[%c0_61, %c0_62, %c0_63], %128 {strides = array<i32>} : memref<1x8x32xf32, #tpu.memory_space<vmem>>, vector<1x8x32xf32>,
    %129 = vector.shape_cast %125 : vector<64x32xf32> to vector<8x8x32xf32>
    %c0_64 = arith.constant 0 : index
    %c0_65 = arith.constant 0 : index
    %c0_66 = arith.constant 0 : index
    %c0_67 = arith.constant 0 : index
    %130 = vector.load %arg23[%c0_64, %c0_65, %c0_66, %c0_67] : memref<1x8x8x32xf32, #tpu.memory_space<vmem>>, vector<1x8x8x32xf32>
    %131 = vector.shape_cast %130 : vector<1x8x8x32xf32> to vector<8x8x32xf32>
    %132 = vector.shape_cast %129 : vector<8x8x32xf32> to vector<1x8x8x32xf32>
    tpu.vector_store %arg23[%c0_64, %c0_65, %c0_66, %c0_67], %132 {strides = array<i32>} : memref<1x8x8x32xf32, #tpu.memory_space<vmem>>, vector<1x8x8x32xf32>,
    return
  }
  func.func @transform_0(%arg0: i32, %arg1: i32) -> (i32, i32, i32) {
    %c0_i32 = arith.constant 0 : i32
    %c0_i32_0 = arith.constant 0 : i32
    %c0_i32_1 = arith.constant 0 : i32
    return %arg0, %c0_i32, %c0_i32_0 : i32, i32, i32
  }
  func.func @transform_1(%arg0: i32, %arg1: i32) -> (i32, i32, i32, i32) {
    %c0_i32 = arith.constant 0 : i32
    %c0_i32_0 = arith.constant 0 : i32
    %c0_i32_1 = arith.constant 0 : i32
    return %arg0, %arg1, %c0_i32, %c0_i32_0 : i32, i32, i32, i32
  }
  func.func @transform_2(%arg0: i32, %arg1: i32) -> (i32, i32) {
    %c0_i32 = arith.constant 0 : i32
    %c0_i32_0 = arith.constant 0 : i32
    %c0_i32_1 = arith.constant 0 : i32
    return %c0_i32, %c0_i32_0 : i32, i32
  }
  func.func @transform_3(%arg0: i32, %arg1: i32) -> (i32, i32) {
    %c0_i32 = arith.constant 0 : i32
    %c0_i32_0 = arith.constant 0 : i32
    %c0_i32_1 = arith.constant 0 : i32
    return %c0_i32, %c0_i32_0 : i32, i32
  }
  func.func @transform_4(%arg0: i32, %arg1: i32) -> (i32, i32) {
    %c0_i32 = arith.constant 0 : i32
    %c0_i32_0 = arith.constant 0 : i32
    %c0_i32_1 = arith.constant 0 : i32
    return %c0_i32, %c0_i32_0 : i32, i32
  }
  func.func @transform_5(%arg0: i32, %arg1: i32) -> (i32, i32) {
    %c0_i32 = arith.constant 0 : i32
    %c0_i32_0 = arith.constant 0 : i32
    %c0_i32_1 = arith.constant 0 : i32
    return %c0_i32, %c0_i32_0 : i32, i32
  }
  func.func @transform_6(%arg0: i32, %arg1: i32) -> (i32, i32) {
    %c0_i32 = arith.constant 0 : i32
    %c0_i32_0 = arith.constant 0 : i32
    %c0_i32_1 = arith.constant 0 : i32
    return %c0_i32, %c0_i32_0 : i32, i32
  }
  func.func @transform_7(%arg0: i32, %arg1: i32) -> (i32, i32) {
    %c0_i32 = arith.constant 0 : i32
    %c0_i32_0 = arith.constant 0 : i32
    %c0_i32_1 = arith.constant 0 : i32
    return %c0_i32, %c0_i32_0 : i32, i32
  }
  func.func @transform_8(%arg0: i32, %arg1: i32) -> (i32, i32) {
    %c0_i32 = arith.constant 0 : i32
    %c0_i32_0 = arith.constant 0 : i32
    %c0_i32_1 = arith.constant 0 : i32
    return %c0_i32, %c0_i32_0 : i32, i32
  }
  func.func @transform_9(%arg0: i32, %arg1: i32) -> (i32, i32) {
    %c0_i32 = arith.constant 0 : i32
    %c0_i32_0 = arith.constant 0 : i32
    %c0_i32_1 = arith.constant 0 : i32
    return %c0_i32, %c0_i32_0 : i32, i32
  }
  func.func @transform_10(%arg0: i32, %arg1: i32) -> (i32, i32) {
    %c0_i32 = arith.constant 0 : i32
    %c0_i32_0 = arith.constant 0 : i32
    %c0_i32_1 = arith.constant 0 : i32
    return %c0_i32, %c0_i32_0 : i32, i32
  }
  func.func @transform_11(%arg0: i32, %arg1: i32) -> (i32, i32) {
    %c0_i32 = arith.constant 0 : i32
    %c0_i32_0 = arith.constant 0 : i32
    %c0_i32_1 = arith.constant 0 : i32
    return %c0_i32, %c0_i32_0 : i32, i32
  }
  func.func @transform_12(%arg0: i32, %arg1: i32) -> (i32, i32) {
    %c0_i32 = arith.constant 0 : i32
    %c0_i32_0 = arith.constant 0 : i32
    %c0_i32_1 = arith.constant 0 : i32
    return %c0_i32, %c0_i32_0 : i32, i32
  }
  func.func @transform_13(%arg0: i32, %arg1: i32) -> (i32, i32) {
    %c0_i32 = arith.constant 0 : i32
    %c0_i32_0 = arith.constant 0 : i32
    %c0_i32_1 = arith.constant 0 : i32
    return %c0_i32, %c0_i32_0 : i32, i32
  }
  func.func @transform_14(%arg0: i32, %arg1: i32) -> (i32, i32) {
    %c0_i32 = arith.constant 0 : i32
    %c0_i32_0 = arith.constant 0 : i32
    %c0_i32_1 = arith.constant 0 : i32
    return %c0_i32, %c0_i32_0 : i32, i32
  }
  func.func @transform_15(%arg0: i32, %arg1: i32) -> (i32, i32) {
    %c0_i32 = arith.constant 0 : i32
    %c0_i32_0 = arith.constant 0 : i32
    %c0_i32_1 = arith.constant 0 : i32
    return %c0_i32, %c0_i32_0 : i32, i32
  }
  func.func @transform_16(%arg0: i32, %arg1: i32) -> (i32, i32) {
    %c0_i32 = arith.constant 0 : i32
    %c0_i32_0 = arith.constant 0 : i32
    %c0_i32_1 = arith.constant 0 : i32
    return %c0_i32, %c0_i32_0 : i32, i32
  }
  func.func @transform_17(%arg0: i32, %arg1: i32) -> (i32, i32) {
    %c0_i32 = arith.constant 0 : i32
    %c0_i32_0 = arith.constant 0 : i32
    %c0_i32_1 = arith.constant 0 : i32
    return %c0_i32, %c0_i32_0 : i32, i32
  }
  func.func @transform_18(%arg0: i32, %arg1: i32) -> (i32, i32) {
    %c0_i32 = arith.constant 0 : i32
    %c0_i32_0 = arith.constant 0 : i32
    %c0_i32_1 = arith.constant 0 : i32
    return %c0_i32, %c0_i32_0 : i32, i32
  }
  func.func @transform_19(%arg0: i32, %arg1: i32) -> (i32, i32) {
    %c0_i32 = arith.constant 0 : i32
    %c0_i32_0 = arith.constant 0 : i32
    %c0_i32_1 = arith.constant 0 : i32
    return %c0_i32, %c0_i32_0 : i32, i32
  }
  func.func @transform_20(%arg0: i32, %arg1: i32) -> (i32, i32, i32) {
    %c0_i32 = arith.constant 0 : i32
    %c0_i32_0 = arith.constant 0 : i32
    return %arg0, %arg1, %c0_i32 : i32, i32, i32
  }
  func.func @transform_21(%arg0: i32, %arg1: i32) -> (i32, i32, i32, i32) {
    %c0_i32 = arith.constant 0 : i32
    %c0_i32_0 = arith.constant 0 : i32
    %c0_i32_1 = arith.constant 0 : i32
    return %arg0, %arg1, %c0_i32, %c0_i32_0 : i32, i32, i32, i32
  }
}

</mosaic_0001>

<bundles_post_ra>
// kernel: tpu_custom_call.1
= control target key start
LH: loop header
LB: loop body
LE: loop exit
PB: predicated region body
PF: predicated region fallthrough
CT: control target
= control target key end

     0   :  { %s5024_s0 = inlined_call_operand.vmem [shape: f32[2,8,32], index: 0, kind: input, shape index: {}]   ;;  %s5025_s1 = inlined_call_operand.hbm [shape: f32[2,8,8,32], index: 1, kind: input, shape index: {}]   ;;  %s5026_s2 = inlined_call_operand.vmem [shape: bf16[32,4], index: 2, kind: input, shape index: {}]   ;;  %s5027_s3 = inlined_call_operand.hbm [shape: bf16[4,32], index: 3, kind: input, shape index: {}]   ;;  %s5028_s4 = inlined_call_operand.vmem [shape: bf16[32,32], index: 4, kind: input, shape index: {}]   ;;  %s5029_s5 = inlined_call_operand.hbm [shape: f32[1,32], index: 5, kind: input, shape index: {}]   ;;  %s5030_s6 = inlined_call_operand.hbm [shape: bf16[32,32], index: 6, kind: input, shape index: {}]   ;;  %s5031_s7 = inlined_call_operand.hbm [shape: f32[1,32], index: 7, kind: input, shape index: {}]   ;;  %s5032_s8 = inlined_call_operand.vmem [shape: bf16[32,32], index: 8, kind: input, shape index: {}]   ;;  %s5033_s9 = inlined_call_operand.vmem [shape: f32[1,32], index: 9, kind: input, shape index: {}]   ;;  %s5034_s10 = inlined_call_operand.hbm [shape: bf16[32,32], index: 10, kind: input, shape index: {}]   ;;  %s5035_s11 = inlined_call_operand.vmem [shape: f32[1,32], index: 11, kind: input, shape index: {}]   ;;  %s5036_s12 = inlined_call_operand.hbm [shape: bf16[32,32], index: 12, kind: input, shape index: {}]   ;;  %s5037_s13 = inlined_call_operand.hbm [shape: f32[1,32], index: 13, kind: input, shape index: {}]   ;;  %s5038_s14 = inlined_call_operand.vmem [shape: bf16[32,32], index: 14, kind: input, shape index: {}]   ;;  %s5039_s15 = inlined_call_operand.hbm [shape: f32[1,32], index: 15, kind: input, shape index: {}]   ;;  %s5040_s16 = inlined_call_operand.hbm [shape: bf16[32,32], index: 16, kind: input, shape index: {}]   ;;  %s5041_s17 = inlined_call_operand.hbm [shape: f32[1,32], index: 17, kind: input, shape index: {}]   ;;  %s5042_s18 = inlined_call_operand.vmem [shape: bf16[32,32], index: 18, kind: input, shape index: {}]   ;;  %s5043_s19 = inlined_call_operand.vmem [shape: f32[1,32], index: 19, kind: input, shape index: {}]   ;;  %s5044_s20 = inlined_call_operand.hbm [shape: f32[2,8,32], index: 20, kind: output, shape index: {0}]   ;;  %s5045_s21 = inlined_call_operand.hbm [shape: f32[2,8,8,32], index: 21, kind: output, shape index: {1}]  }
   0x1   :  { %5076 = sst [smem:[#allocation40_spill]] %s5024_s0 }
   0x2   :  { %5077 = sst [smem:[#allocation41_spill]] %s5025_s1 }
   0x3   :  { %5078 = sst [smem:[#allocation42_spill]] %s5026_s2 }
   0x4   :  { %5079 = sst [smem:[#allocation43_spill]] %s5027_s3 }
   0x5   :  { %5080 = sst [smem:[#allocation44_spill]] %s5028_s4 }
   0x6   :  { %5081 = sst [smem:[#allocation45_spill]] %s5029_s5 }
   0x7   :  { %5082 = sst [smem:[#allocation46_spill]] %s5030_s6 }
   0x8   :  { %5083 = sst [smem:[#allocation47_spill]] %s5031_s7 }
   0x9   :  { %5084 = sst [smem:[#allocation48_spill]] %s5032_s8 }
   0xa   :  { %5085 = sst [smem:[#allocation49_spill]] %s5033_s9 }
   0xb   :  { %5086 = sst [smem:[#allocation50_spill]] %s5034_s10 }
   0xc   :  { %5087 = sst [smem:[#allocation51_spill]] %s5035_s11 }
   0xd   :  { %5088 = sst [smem:[#allocation52_spill]] %s5036_s12 }
   0xe   :  { %5089 = sst [smem:[#allocation53_spill]] %s5038_s14 }
   0xf   :  { %5090 = sst [smem:[#allocation54_spill]] %s5042_s18 }
  0x10   :  { %5091 = sst [smem:[#allocation55_spill]] %s5043_s19 }
  0x11   :  { %5092 = sst [smem:[#allocation56_spill]] %s5044_s20 }
  0x12   :  { %5093 = sst [smem:[#allocation57_spill]] %s5045_s21 }
  0x13   :  { %27 = vsyncpa [#allocation3], 0 }
  0x14   :  { %29 = vsyncpa [#allocation3 + $0x1], 0 }
  0x15   :  { %30 = vsyncpa [#allocation6], 0 }
  0x16   :  { %31 = vsyncpa [#allocation9], 0 }
  0x17   :  { %32 = vsyncpa [#allocation12], 0 }
  0x18   :  { %33 = vsyncpa [#allocation15], 0 }
  0x19   :  { %34 = vsyncpa [#allocation18], 0 }
  0x1a   :  { %35 = vsyncpa [#allocation4], 0 }
  0x1b   :  { %37 = vsyncpa [#allocation4 + $0x1], 0 }
  0x1c   :  { %38 = vsyncpa [#allocation22], 0 }
  0x1d   :  { %40 = vsyncpa [#allocation22 + $0x1], 0  ;;  %s4136_s2 = smov 0   ;;  %s4138_s25 = smov 0  }
  0x1e   :  { %s4140_s26 = smov 0   ;;  %s4142_s27 = smov 0  }
  0x1f   :  { %s4144_s3 = smov 0   ;;  %s4146_s28 = smov 0  }
  0x20 LB: > { %5094 = sst [smem:[#allocation31_spill]] %s3994_s27  ;;  %s5051_s29 = sadd.s32 4294967295, %s4002_s28   ;;  %s4002_s28 = sphi %s4146_s28, %s46_s28   ;;  %s3998_s3 = sphi %s4144_s3, %s5161_s3   ;;  %s3994_s27 = sphi %s4142_s27, %s5160_s27   ;;  %s3990_s26 = sphi %s4140_s26, %s5159_s26   ;;  %s3986_s25 = sphi %s4138_s25, %s5158_s25   ;;  %s3982_s2 = sphi %s4136_s2, %s5157_s2  }
  0x21   : > { %p2956_p0 = scmp.ge.s32.totalorder %s4002_s28, 1  ;;  %p4170_p1 = scmp.eq.s32.totalorder %s5051_s29, 0 }
  0x22   : > { %p551_p2 = scmp.lt.s32.totalorder %s4002_s28, 3  ;;  %s4004_s30 = smov [#allocation5]  }
  0x23   : > { %s5095_s0 = scalar_select %p4170_p1, 1, 0 }
  0x24   : > { %p4175_p3 = pnand %p2956_p0, %p551_p2  ;;  %s567_s5 = sshll.u32 %s4004_s30, 4  ;;  %s568_s5 = int_to_ptr.vmem [resolvable:$true] %s567_s5 }
  0x25   : > { %s4005_s22 = smov [#allocation8]   ;;  %s4006_s24 = smov [#allocation11]  }
  0x26   : > { %s5096_s4 = scalar_select %p4175_p3, 1, 0 }
  0x27   : > { %p3329_p5 = pneg %p4175_p3  ;;  %s591_s23 = sshll.u32 %s4005_s22, 4  ;;  %s4188_s23 = int_to_ptr.vmem [resolvable:$true] %s591_s23 }
  0x28   : > { %s4190_s29 = sshll.u32 %s4006_s24, 4  ;;  %s5098_s30 = sld [smem:[#allocation43_spill]]  ;;  %s622_s29 = int_to_ptr.vmem [resolvable:$true] %s4190_s29 }
  0x29   : > { %p4184_p6 = pnand %p3329_p5, %p4170_p1 }
  0x2b   : > { %p4200_p8 = pneg %p4184_p6 }
  0x2e   : > { %s3558_s20 = scalar_lea.hbm %s5098_s30, 32 }
  0x2f   : > { %p3559_p7 = scmp.ne.s32.totalorder %s5098_s30, %s3558_s20  ;;  %p3565_p11 = scmp.lt.u32.totalorder %s3558_s20, %s5098_s30 }
  0x31   : > { %p3561_p9 = pnand %p4200_p8, %p3559_p7 }
  0x33   : > { %p3562_p10 = pneg %p3561_p9 }
  0x35   : > { %p3567_p12 = pnand %p3565_p11, %p3562_p10 }
  0x37   : > { %3570 = shalt.err (!%p3567_p12)
}
  0x38   : > { %s3571_s19 = scalar_lea.vmem %s568_s5, 32  ;;  %p3579_p5 = scmp.lt.s32.totalorder %s568_s5, %s568_s5 }
  0x39   : > { %p3572_p13 = scmp.ne.s32.totalorder %s568_s5, %s3571_s19  ;;  %p3580_p4 = scmp.lt.s32.totalorder %s3571_s19, %s3571_s19 }
  0x3b   : > { %p3574_p0 = pnand %p3572_p13, %p4200_p8  ;;  %p3581_p3 = por %p3580_p4, %p3579_p5 }
  0x3d   : > { %p3575_p2 = pneg %p3574_p0 }
  0x3f   : > { %p3582_p1 = pnand %p3581_p3, %p3575_p2 }
  0x41   : > { %3585 = shalt.err (!%p3582_p1)
}
  0x42   : > { %3332 = dma.hbm_to_vmem [thread:$0]  (!%p4184_p6), %s5098_s30, 32, %s568_s5, [#allocation6]  }
  0x43   : > { %s5100_s6 = sld [smem:[#allocation46_spill]] }
  0x49   : > { %s3586_s21 = scalar_lea.hbm %s5100_s6, 256 }
  0x4a   : > { %p3587_p7 = scmp.ne.s32.totalorder %s5100_s6, %s3586_s21  ;;  %p3593_p1 = scmp.lt.u32.totalorder %s3586_s21, %s5100_s6 }
  0x4c   : > { %p3589_p9 = pnand %p3587_p7, %p4200_p8 }
  0x4e   : > { %p3590_p4 = pneg %p3589_p9 }
  0x50   : > { %p3595_p3 = pnand %p3593_p1, %p3590_p4 }
  0x52   : > { %3598 = shalt.err (!%p3595_p3)
}
  0x53   : > { %s3599_s5 = scalar_lea.vmem %s4188_s23, 256  ;;  %p3607_p13 = scmp.lt.s32.totalorder %s4188_s23, %s4188_s23 }
  0x54   : > { %p3600_p10 = scmp.ne.s32.totalorder %s4188_s23, %s3599_s5  ;;  %p3608_p0 = scmp.lt.s32.totalorder %s3599_s5, %s3599_s5 }
  0x56   : > { %p3602_p11 = pnand %p3600_p10, %p4200_p8  ;;  %p3609_p2 = por %p3608_p0, %p3607_p13 }
  0x58   : > { %p3603_p12 = pneg %p3602_p11 }
  0x5a   : > { %p3610_p5 = pnand %p3609_p2, %p3603_p12 }
  0x5c   : > { %3613 = shalt.err (!%p3610_p5)
}
  0x5d   : > { %s4007_s8 = smov 64   ;;  %s4008_s14 = smov 4  }
  0x5e   : > { %3338 = dma.hbm_to_vmem [thread:$0]  (!%p4184_p6), %s5100_s6, 256, %s4188_s23, [#allocation9], %s4007_s8, %s4007_s8, %s4008_s14  }
  0x5f   : > { %s5101_s10 = sld [smem:[#allocation50_spill]] }
  0x65   : > { %s3614_s21 = scalar_lea.hbm %s5101_s10, 256 }
  0x66   : > { %p3615_p7 = scmp.ne.s32.totalorder %s5101_s10, %s3614_s21  ;;  %p3621_p1 = scmp.lt.u32.totalorder %s3614_s21, %s5101_s10 }
  0x68   : > { %p3617_p9 = pnand %p3615_p7, %p4200_p8 }
  0x6a   : > { %p3618_p4 = pneg %p3617_p9 }
  0x6c   : > { %p3623_p3 = pnand %p3621_p1, %p3618_p4 }
  0x6e   : > { %3626 = shalt.err (!%p3623_p3)
}
  0x6f   : > { %s3627_s9 = scalar_lea.vmem %s622_s29, 256  ;;  %p3635_p13 = scmp.lt.s32.totalorder %s622_s29, %s622_s29 }
  0x70   : > { %p3628_p10 = scmp.ne.s32.totalorder %s622_s29, %s3627_s9  ;;  %p3636_p0 = scmp.lt.s32.totalorder %s3627_s9, %s3627_s9 }
  0x72   : > { %p3630_p11 = pnand %p3628_p10, %p4200_p8  ;;  %p3637_p2 = por %p3636_p0, %p3635_p13 }
  0x74   : > { %p3631_p12 = pneg %p3630_p11 }
  0x76   : > { %p3638_p5 = pnand %p3637_p2, %p3631_p12 }
  0x78   : > { %3641 = shalt.err (!%p3638_p5)
}
  0x79   : > { %3344 = dma.hbm_to_vmem [thread:$0]  (!%p4184_p6), %s5101_s10, 256, %s622_s29, [#allocation12], %s4007_s8, %s4007_s8, %s4008_s14  }
  0x7a   : > { %s4009_s18 = smov [#allocation14]   ;;  %s4010_s20 = smov [#allocation17]  }
  0x7b   : > { %s651_s11 = sshll.u32 %s4009_s18, 4  ;;  %s675_s21 = sshll.u32 %s4010_s20, 4  ;;  %s652_s11 = int_to_ptr.vmem [resolvable:$true] %s651_s11  ;;  %s676_s21 = int_to_ptr.vmem [resolvable:$true] %s675_s21 }
  0x7c   : > { %s3642_s5 = scalar_lea.hbm %s5037_s13, 16 }
  0x7d   : > { %p3643_p7 = scmp.ne.s32.totalorder %s5037_s13, %s3642_s5  ;;  %p3649_p1 = scmp.lt.u32.totalorder %s3642_s5, %s5037_s13 }
  0x7f   : > { %p3645_p9 = pnand %p3643_p7, %p4200_p8 }
  0x81   : > { %p3646_p4 = pneg %p3645_p9 }
  0x83   : > { %p3651_p3 = pnand %p3649_p1, %p3646_p4 }
  0x85   : > { %3654 = shalt.err (!%p3651_p3)
}
  0x86   : > { %s3655_s29 = scalar_lea.vmem %s652_s11, 16  ;;  %s3662_s30 = scalar_lea.vmem %s652_s11, 32 }
  0x87   : > { %p3656_p10 = scmp.ne.s32.totalorder %s652_s11, %s3655_s29  ;;  %p3663_p13 = scmp.lt.s32.totalorder %s652_s11, %s652_s11 }
  0x88   : > { %p3664_p0 = scmp.lt.s32.totalorder %s3662_s30, %s3655_s29 }
  0x89   : > { %p3658_p11 = pnand %p3656_p10, %p4200_p8 }
  0x8a   : > { %p3665_p2 = por %p3664_p0, %p3663_p13 }
  0x8b   : > { %p3659_p12 = pneg %p3658_p11 }
  0x8d   : > { %p3666_p5 = pnand %p3665_p2, %p3659_p12 }
  0x8f   : > { %3669 = shalt.err (!%p3666_p5)
}
  0x90   : > { %3350 = dma.hbm_to_vmem [thread:$0]  (!%p4184_p6), %s5037_s13, 16, %s652_s11, [#allocation15]  }
  0x91   : > { %s3670_s24 = scalar_lea.hbm %s5040_s16, 256 }
  0x92   : > { %p3671_p7 = scmp.ne.s32.totalorder %s5040_s16, %s3670_s24  ;;  %p3677_p1 = scmp.lt.u32.totalorder %s3670_s24, %s5040_s16 }
  0x94   : > { %p3673_p9 = pnand %p3671_p7, %p4200_p8 }
  0x96   : > { %p3674_p4 = pneg %p3673_p9 }
  0x98   : > { %p3679_p3 = pnand %p3677_p1, %p3674_p4 }
  0x9a   : > { %3682 = shalt.err (!%p3679_p3)
}
  0x9b   : > { %s3683_s29 = scalar_lea.vmem %s676_s21, 256  ;;  %p3691_p13 = scmp.lt.s32.totalorder %s676_s21, %s676_s21 }
  0x9c   : > { %p3684_p10 = scmp.ne.s32.totalorder %s676_s21, %s3683_s29  ;;  %p3692_p0 = scmp.lt.s32.totalorder %s3683_s29, %s3683_s29 }
  0x9e   : > { %p3686_p11 = pnand %p3684_p10, %p4200_p8  ;;  %p3693_p2 = por %p3692_p0, %p3691_p13 }
  0xa0   : > { %p3687_p12 = pneg %p3686_p11 }
  0xa2   : > { %p3694_p5 = pnand %p3693_p2, %p3687_p12 }
  0xa4   : > { %3697 = shalt.err (!%p3694_p5)
}
  0xa5   : > { %3356 = dma.hbm_to_vmem [thread:$0]  (!%p4184_p6), %s5040_s16, 256, %s676_s21, [#allocation18], %s4007_s8, %s4007_s8, %s4008_s14  }
  0xa6   : > { %s4011_s6 = smov [#allocation7]   ;;  %s4012_s27 = smov [#allocation10]  }
  0xa7   : > { %s581_s18 = sshll.u32 %s4011_s6, 4  ;;  %s605_s20 = sshll.u32 %s4012_s27, 4  ;;  %s582_s18 = int_to_ptr.vmem [resolvable:$true] %s581_s18  ;;  %s606_s20 = int_to_ptr.vmem [resolvable:$true] %s605_s20 }
  0xa8   : > { %s5102_s5 = sld [smem:[#allocation45_spill]] }
  0xae   : > { %s3698_s9 = scalar_lea.hbm %s5102_s5, 16 }
  0xaf   : > { %p3699_p7 = scmp.ne.s32.totalorder %s5102_s5, %s3698_s9  ;;  %p3705_p1 = scmp.lt.u32.totalorder %s3698_s9, %s5102_s5 }
  0xb1   : > { %p3701_p9 = pnand %p3699_p7, %p4200_p8 }
  0xb3   : > { %p3702_p4 = pneg %p3701_p9 }
  0xb5   : > { %p3707_p3 = pnand %p3705_p1, %p3702_p4 }
  0xb7   : > { %3710 = shalt.err (!%p3707_p3)
}
  0xb8   : > { %s3711_s21 = scalar_lea.vmem %s582_s18, 16  ;;  %s3718_s30 = scalar_lea.vmem %s582_s18, 32 }
  0xb9   : > { %p3712_p10 = scmp.ne.s32.totalorder %s582_s18, %s3711_s21  ;;  %p3719_p13 = scmp.lt.s32.totalorder %s582_s18, %s582_s18 }
  0xba   : > { %p3720_p0 = scmp.lt.s32.totalorder %s3718_s30, %s3711_s21 }
  0xbb   : > { %p3714_p11 = pnand %p3712_p10, %p4200_p8 }
  0xbc   : > { %p3721_p2 = por %p3720_p0, %p3719_p13 }
  0xbd   : > { %p3715_p12 = pneg %p3714_p11 }
  0xbf   : > { %p3722_p5 = pnand %p3721_p2, %p3715_p12 }
  0xc1   : > { %3725 = shalt.err (!%p3722_p5)
}
  0xc2   : > { %3335 = dma.hbm_to_vmem [thread:$0]  (!%p4184_p6), %s5102_s5, 16, %s582_s18, [#allocation6]  }
  0xc3   : > { %s5103_s7 = sld [smem:[#allocation47_spill]] }
  0xc9   : > { %s3726_s19 = scalar_lea.hbm %s5103_s7, 16 }
  0xca   : > { %p3727_p7 = scmp.ne.s32.totalorder %s5103_s7, %s3726_s19  ;;  %p3733_p1 = scmp.lt.u32.totalorder %s3726_s19, %s5103_s7 }
  0xcc   : > { %p3729_p9 = pnand %p3727_p7, %p4200_p8 }
  0xce   : > { %p3730_p4 = pneg %p3729_p9 }
  0xd0   : > { %p3735_p3 = pnand %p3733_p1, %p3730_p4 }
  0xd2   : > { %3738 = shalt.err (!%p3735_p3)
}
  0xd3   : > { %s3739_s21 = scalar_lea.vmem %s606_s20, 16  ;;  %s3746_s18 = scalar_lea.vmem %s606_s20, 32 }
  0xd4   : > { %p3740_p10 = scmp.ne.s32.totalorder %s606_s20, %s3739_s21  ;;  %p3747_p13 = scmp.lt.s32.totalorder %s606_s20, %s606_s20 }
  0xd5   : > { %p3748_p0 = scmp.lt.s32.totalorder %s3746_s18, %s3739_s21 }
  0xd6   : > { %p3742_p11 = pnand %p3740_p10, %p4200_p8 }
  0xd7   : > { %p3749_p2 = por %p3748_p0, %p3747_p13 }
  0xd8   : > { %p3743_p12 = pneg %p3742_p11 }
  0xda   : > { %p3750_p5 = pnand %p3749_p2, %p3743_p12 }
  0xdc   : > { %3753 = shalt.err (!%p3750_p5)
}
  0xdd   : > { %3341 = dma.hbm_to_vmem [thread:$0]  (!%p4184_p6), %s5103_s7, 16, %s606_s20, [#allocation9]  }
  0xde   : > { %s4013_s27 = smov [#allocation13]   ;;  %s4014_s24 = smov [#allocation16]  }
  0xdf   : > { %s637_s10 = sshll.u32 %s4013_s27, 4  ;;  %s665_s19 = sshll.u32 %s4014_s24, 4  ;;  %s638_s10 = int_to_ptr.vmem [resolvable:$true] %s637_s10  ;;  %s666_s19 = int_to_ptr.vmem [resolvable:$true] %s665_s19 }
  0xe0   : > { %s5104_s12 = sld [smem:[#allocation52_spill]] }
  0xe6   : > { %s3754_s29 = scalar_lea.hbm %s5104_s12, 256 }
  0xe7   : > { %p3755_p7 = scmp.ne.s32.totalorder %s5104_s12, %s3754_s29  ;;  %p3761_p1 = scmp.lt.u32.totalorder %s3754_s29, %s5104_s12 }
  0xe9   : > { %p3757_p9 = pnand %p3755_p7, %p4200_p8 }
  0xeb   : > { %p3758_p4 = pneg %p3757_p9 }
  0xed   : > { %p3763_p3 = pnand %p3761_p1, %p3758_p4 }
  0xef   : > { %3766 = shalt.err (!%p3763_p3)
}
  0xf0   : > { %s3767_s20 = scalar_lea.vmem %s638_s10, 256  ;;  %p3775_p13 = scmp.lt.s32.totalorder %s638_s10, %s638_s10 }
  0xf1   : > { %p3768_p10 = scmp.ne.s32.totalorder %s638_s10, %s3767_s20  ;;  %p3776_p0 = scmp.lt.s32.totalorder %s3767_s20, %s3767_s20 }
  0xf3   : > { %p3770_p11 = pnand %p3768_p10, %p4200_p8  ;;  %p3777_p2 = por %p3776_p0, %p3775_p13 }
  0xf5   : > { %p3771_p12 = pneg %p3770_p11 }
  0xf7   : > { %p3778_p5 = pnand %p3777_p2, %p3771_p12 }
  0xf9   : > { %3781 = shalt.err (!%p3778_p5)
}
  0xfa   : > { %3347 = dma.hbm_to_vmem [thread:$0]  (!%p4184_p6), %s5104_s12, 256, %s638_s10, [#allocation12], %s4007_s8, %s4007_s8, %s4008_s14  }
  0xfb   : > { %s3782_s23 = scalar_lea.hbm %s5039_s15, 16 }
  0xfc   : > { %p3783_p7 = scmp.ne.s32.totalorder %s5039_s15, %s3782_s23  ;;  %p3789_p1 = scmp.lt.u32.totalorder %s3782_s23, %s5039_s15 }
  0xfe   : > { %p3785_p9 = pnand %p3783_p7, %p4200_p8 }
 0x100   : > { %p3786_p4 = pneg %p3785_p9 }
 0x102   : > { %p3791_p3 = pnand %p3789_p1, %p3786_p4 }
 0x104   : > { %3794 = shalt.err (!%p3791_p3)
}
 0x105   : > { %s3795_s30 = scalar_lea.vmem %s666_s19, 16  ;;  %s3802_s8 = scalar_lea.vmem %s666_s19, 32 }
 0x106   : > { %p3796_p10 = scmp.ne.s32.totalorder %s666_s19, %s3795_s30  ;;  %p3803_p13 = scmp.lt.s32.totalorder %s666_s19, %s666_s19 }
 0x107   : > { %p3804_p0 = scmp.lt.s32.totalorder %s3802_s8, %s3795_s30 }
 0x108   : > { %p3798_p11 = pnand %p3796_p10, %p4200_p8 }
 0x109   : > { %p3805_p2 = por %p3804_p0, %p3803_p13 }
 0x10a   : > { %p3799_p12 = pneg %p3798_p11 }
 0x10c   : > { %p3806_p5 = pnand %p3805_p2, %p3799_p12 }
 0x10e   : > { %3809 = shalt.err (!%p3806_p5)
}
 0x10f   : > { %3353 = dma.hbm_to_vmem [thread:$0]  (!%p4184_p6), %s5039_s15, 16, %s666_s19, [#allocation15]  }
 0x110   : > { %s4015_s20 = smov [#allocation19]   ;;  %s3810_s9 = scalar_lea.hbm %s5041_s17, 16 }
 0x111   : > { %s689_s6 = sshll.u32 %s4015_s20, 4  ;;  %p3811_p7 = scmp.ne.s32.totalorder %s5041_s17, %s3810_s9  ;;  %s690_s6 = int_to_ptr.vmem [resolvable:$true] %s689_s6 }
 0x112   : > { %p3817_p1 = scmp.lt.u32.totalorder %s3810_s9, %s5041_s17 }
 0x113   : > { %p3813_p9 = pnand %p3811_p7, %p4200_p8 }
 0x115   : > { %p3814_p4 = pneg %p3813_p9 }
 0x117   : > { %p3819_p3 = pnand %p3817_p1, %p3814_p4 }
 0x119   : > { %3822 = shalt.err (!%p3819_p3)
}
 0x11a   : > { %s3823_s19 = scalar_lea.vmem %s690_s6, 16  ;;  %s3830_s18 = scalar_lea.vmem %s690_s6, 32 }
 0x11b   : > { %p3824_p10 = scmp.ne.s32.totalorder %s690_s6, %s3823_s19  ;;  %p3831_p13 = scmp.lt.s32.totalorder %s690_s6, %s690_s6 }
 0x11c   : > { %p3832_p0 = scmp.lt.s32.totalorder %s3830_s18, %s3823_s19 }
 0x11d   : > { %p3826_p11 = pnand %p3824_p10, %p4200_p8 }
 0x11e   : > { %p3833_p2 = por %p3832_p0, %p3831_p13 }
 0x11f   : > { %p3827_p12 = pneg %p3826_p11 }
 0x121   : > { %p3834_p5 = pnand %p3833_p2, %p3827_p12 }
 0x123   : > { %3837 = shalt.err (!%p3834_p5)
}
 0x124   : > { %3359 = dma.hbm_to_vmem [thread:$0]  (!%p4184_p6), %s5041_s17, 16, %s690_s6, [#allocation18]  }
 0x125   : > { %s2955_s22 = sadd.s32 4294967294, %s4002_s28   ;;  %s58_s14 = sadd.s32 1, %s3998_s3 }
 0x126   : > { %p60_p8 = scmp.ge.s32.totalorder %s58_s14, 2  ;;  %s93_s1 = sadd.s32 1, %s3990_s26 }
 0x127   : > { %p100_p7 = scmp.ne.s32.totalorder %s3990_s26, %s3986_s25  ;;  %p101_p9 = scmp.eq.s32.totalorder %s4002_s28, 0 }
 0x128   : > { %s5163_s14 = smov (%p60_p8, %s58_s14), 0  ;;  %p106_p1 = scmp.ne.s32.totalorder %s3986_s25, %s3982_s2 }
 0x129   : > { %p4404_p4 = por %p101_p9, %p100_p7  ;;  %s88_s20 = ssub.s32 %s3998_s3, %s5163_s14 }
 0x12a   : > { %s5106_s6 = sadd.s32 4294967295, %s4002_s28   ;;  %p91_p3 = scmp.eq.s32.totalorder %s88_s20, 0 }
 0x12b   : > { %p510_p6 = scmp.eq.s32.totalorder %s5106_s6, 1  ;;  %p5107_p10 = scmp.ne.s32.totalorder %s5095_s0, 0 }
 0x12c   : > { %p516_p13 = scmp.eq.s32.totalorder %s2955_s22, 1  ;;  %p3381_p2 = scmp.lt.s32.totalorder %s4002_s28, 2 }
 0x12d   : > { %p4416_p11 = por %p5107_p10, %p106_p1  ;;  %p4420_p12 = por %p510_p6, %p100_p7 }
 0x12e   : > { %s4425_s9 = scalar_select %p91_p3, %s3990_s26, %s93_s1  }
 0x12f   : > { %s5109_s24 = scalar_select %p4420_p12, 1, 0 }
 0x130   : > { %p4427_p0 = por %p516_p13, %p106_p1  ;;  %s713_s29 = sand.u32 1, %s3990_s26  }
 0x131   : > { %s3063_s11 = sshll.u32 %s3998_s3, 10  ;;  %s2968_s21 = sshll.u32 %s713_s29, 6 }
 0x132   : > { %s5110_s23 = scalar_select %p4427_p0, 1, 0 }
 0x133   : > { %s5111_s30 = sld [smem:[#allocation41_spill]]  ;;  %s717_s22 = scalar_lea.vmem [#allocation2], %s2968_s21 }
 0x134   : > { %s726_s1 = sshll.u32 %s717_s22, 4  ;;  %p4441_p5 = pnand %p3381_p2, %p4404_p4  ;;  %s4445_s1 = int_to_ptr.vmem [resolvable:$true] %s726_s1 }
 0x135   : > { %s4447_s6 = scalar_lea.sflag [#allocation3], %s713_s29 }
 0x136   : > { %p3840_p7 = pneg %p4441_p5 }
 0x139   : > { %s4437_s8 = scalar_lea.hbm %s5111_s30, %s3063_s11  ;;  %s3843_s21 = scalar_lea.hbm %s5111_s30, 2048 }
 0x13a   : > { %s3838_s19 = scalar_lea.hbm %s4437_s8, 1024  ;;  %p3844_p4 = scmp.lt.u32.totalorder %s4437_s8, %s5111_s30 }
 0x13b   : > { %p3839_p8 = scmp.ne.s32.totalorder %s4437_s8, %s3838_s19  ;;  %p3845_p6 = scmp.lt.u32.totalorder %s3843_s21, %s3838_s19 }
 0x13c   : > { %p3847_p10 = scmp.lt.u32.totalorder %s3838_s19, %s4437_s8 }
 0x13d   : > { %p3841_p9 = pnand %p3840_p7, %p3839_p8  ;;  %p3846_p3 = por %p3845_p6, %p3844_p4 }
 0x13f   : > { %p3842_p1 = pneg %p3841_p9  ;;  %p3848_p13 = por %p3847_p10, %p3846_p3 }
 0x141   : > { %p3849_p2 = pnand %p3848_p13, %p3842_p1 }
 0x143   : > { %3852 = shalt.err (!%p3849_p2)
}
 0x144   : > { %s3853_s29 = scalar_lea.vmem %s4445_s1, 1024  ;;  %s4016_s11 = smov [#allocation2]  }
 0x145   : > { %p3854_p8 = scmp.ne.s32.totalorder %s4445_s1, %s3853_s29  ;;  %s3858_s10 = sshll.u32 %s4016_s11, 4  ;;  %s3859_s10 = int_to_ptr.vmem [resolvable:$false] %s3858_s10 }
 0x146   : > { %s3860_s18 = scalar_lea.vmem %s3859_s10, 2048  ;;  %p3861_p12 = scmp.lt.s32.totalorder %s4445_s1, %s3859_s10 }
 0x147   : > { %p3856_p9 = pnand %p3854_p8, %p3840_p7  ;;  %p3862_p4 = scmp.lt.s32.totalorder %s3860_s18, %s3853_s29 }
 0x149   : > { %p3857_p0 = pneg %p3856_p9  ;;  %p3863_p6 = por %p3862_p4, %p3861_p12 }
 0x14b   : > { %p3864_p3 = pnand %p3863_p6, %p3857_p0 }
 0x14d   : > { %3867 = shalt.err (!%p3864_p3)
}
 0x14e   : > { %s4017_s19 = smov 128   ;;  %s4018_s21 = smov 8  }
 0x14f   : > { %3363 = dma.hbm_to_vmem [thread:$0]  (!%p4441_p5), %s4437_s8, 1024, %s4445_s1, %s4447_s6, %s4017_s19, %s4017_s19, %s4018_s21  }
 0x150   : > { %p5113_p7 = scmp.ne.s32.totalorder %s5096_s4, 0 }
 0x152   : > { %738 = sbr.rel (%p5113_p7) target bundleno = 1628 (0x65c), region = 100 }
 0x159   : > { %s4478_s22 = sand.u32 1, %s3986_s25  }
 0x15a   : > { %s5071_s29 = sshll.u32 %s4478_s22, 6  ;;  %s741_s11 = scalar_lea.sflag [#allocation3], %s4478_s22 }
 0x15b   : > { %s4484_s10 = scalar_lea.vmem [#allocation2], %s5071_s29 }
 0x15c   : > { %3949 = dma.done.wait (%p4416_p11), %s741_s11, 1024  }
 0x15d   : > { %3951 = vsyncadd (%p4416_p11), %s741_s11, 4294966272  ;;  %p5114_p12 = scmp.ne.s32.totalorder %s5095_s0, 0 }
 0x15f   : > { %3953 = dma.done.wait (%p5114_p12), [#allocation6], 48  }
 0x160   : > { %3955 = vsyncadd (%p5114_p12), [#allocation6], 4294967248 }
 0x161   : > { %3957 = dma.done.wait (%p5114_p12), [#allocation9], 272  }
 0x162   : > { %3959 = vsyncadd (%p5114_p12), [#allocation9], 4294967024 }
 0x163   : > { %3961 = dma.done.wait (%p5114_p12), [#allocation12], 512  }
 0x164   : > { %3963 = vsyncadd (%p5114_p12), [#allocation12], 4294966784 }
 0x165   : > { %3965 = dma.done.wait (%p5114_p12), [#allocation15], 32  }
 0x166   : > { %3967 = vsyncadd (%p5114_p12), [#allocation15], 4294967264 }
 0x167   : > { %3969 = dma.done.wait (%p5114_p12), [#allocation18], 272  }
 0x168   : > { %3971 = vsyncadd (%p5114_p12), [#allocation18], 4294967024  ;;  %s5115_s4 = sld [smem:[#allocation31_spill]]  ;;  %v5063_v0 = vmov 0.0   ;;  %vm4020_vm0 = vmmov 0   ;;  %v3460_v1 = vld [vmem:[#allocation13] sm:$0xff]   ;;  %v1353_v31 = vlaneseq }
 0x169   : > { %3134 = vmatprep.subr.bf16.mxu1 %v5063_v0  ;;  %3150 = vmatprep.subr.bf16.mxu0 %v5063_v0  ;;  %s5116_s20 = sld [smem:[#allocation40_spill]]  ;;  %v3461_v2 = vld [vmem:[#allocation13 + $0x8] sm:$0xff]   ;;  %s5117_s21 = sld [smem:[#allocation44_spill]]  ;;  %vm897_vm1 = vcmask 261120   ;;  %v860_v8 = vld [vmem:[%s4484_s10] sm:$0xff]  ;;  %v863_v15 = vld [vmem:[%s4484_s10 + $0x18] sm:$0xff] }
 0x16a   : > { %3138 = vmatprep.mubr.msk.bf16.mxu1 %vm4020_vm0, %v5063_v0  ;;  %3154 = vmatprep.mubr.msk.bf16.mxu0 %vm4020_vm0, %v5063_v0  ;;  %s5118_s1 = sld [smem:[#allocation53_spill]]  ;;  %v861_v9 = vld [vmem:[%s4484_s10 + $0x8] sm:$0xff]  ;;  %v862_v14 = vld [vmem:[%s4484_s10 + $0x10] sm:$0xff]  ;;  %v864_v16 = vld [vmem:[%s4484_s10 + $0x20] sm:$0xff]  ;;  %s5119_s11 = sld [smem:[#allocation48_spill]]  ;;  %v1354_v36 = vshrl.u32 %v1353_v31, 7 }
 0x16b   : > { %3135 = vmatpush3.bf16.msra.mxu1 %v3460_v1  ;;  %v1071_v11 = vpack.c.bf16 %v861_v9, %v860_v8  ;;  %v3466_v12 = vld [vmem:[#allocation8] sm:$0xff]   ;;  %v3467_v13 = vld [vmem:[#allocation8 + $0x8] sm:$0xff]   ;;  %v3468_v18 = vld [vmem:[#allocation11] sm:$0xff]   ;;  %v1072_v19 = vpack.c.bf16 %v863_v15, %v862_v14  ;;  %v4021_v29 = vmov 1966171168   ;;  %vm1708_vm2 = vcmask 1041408  }
 0x16c   : > { %3136 = vmatprep.subr.bf16.mxu1 %v5063_v0  ;;  %v865_v17 = vld [vmem:[%s4484_s10 + $0x28] sm:$0xff]  ;;  %v3469_v21 = vld [vmem:[#allocation11 + $0x8] sm:$0xff]   ;;  %v866_v22 = vld [vmem:[%s4484_s10 + $0x30] sm:$0xff]  ;;  %v1351_v30 = vunpack.c.l.s4 %v4021_v29  ;;  %v4593_v62 = vsub.s32 0, %v1354_v36  ;;  %vm1539_vm3 = vcmask 31744   ;;  %vm2509_vm4 = vcmask 1041409  }
 0x16d   : > { %v1073_v20 = vpack.c.bf16 %v865_v17, %v864_v16  ;;  %v867_v23 = vld [vmem:[%s4484_s10 + $0x38] sm:$0xff]  ;;  %v2994_v33 = vld [vmem:[#allocation7] ss:$0 sm:$0xff]  ;;  %v2986_v42 = vld [vmem:[#allocation14] ss:$0 sm:$0xff]  ;;  %vm2511_vm5 = vcmask 1042434  }
 0x16e   : > { %p852_p11 = scmp.lt.s32.totalorder %s5115_s4, 1  ;;  %v1074_v24 = vpack.c.bf16 %v867_v23, %v866_v22  ;;  %v1352_v35 = vunpack.c.0.s8 %v1351_v30  ;;  %v2990_v53 = vld [vmem:[#allocation16] ss:$0 sm:$0xff]  ;;  %5121 = vst [vmem:[#allocation32_spill] sm:$0xff] %v4593_v62  ;;  %vm2513_vm6 = vcmask 1043459   ;;  %vm2515_vm7 = vcmask 1044484  }
 0x16f   : > { %v3462_v3 = vld [vmem:[%s5117_s21] sm:$0xff]   ;;  %v3464_v6 = vld [vmem:[%s5117_s21 + $0x8] sm:$0xff]   ;;  %3137 = vmatpush3.bf16.msra.mxu1 %v3461_v2  ;;  %v2998_v2 = vld [vmem:[#allocation10] ss:$0 sm:$0xff]  ;;  %vm2517_vm8 = vcmask 1045509   ;;  %vm2519_vm9 = vcmask 1046534  }
 0x170   : > { %s853_s27 = scalar_select %p852_p11, %s5115_s4, 1  ;;  %3151 = vmatpush3.bf16.msra.mxu0 %v3462_v3  ;;  %v3463_v7 = vld [vmem:[%s5118_s1] sm:$0xff]   ;;  %3142 = vmatprep.subr.bf16.mxu1 %v5063_v0  ;;  %v3465_v10 = vld [vmem:[%s5118_s1 + $0x8] sm:$0xff]   ;;  %v4583_v45 = vsub.s32 %v1352_v35, %v1354_v36  ;;  %vm2521_vm10 = vcmask 1047559  }
 0x171   : > { %3152 = vmatprep.subr.bf16.mxu0 %v5063_v0  ;;  %v3470_v25 = vld [vmem:[%s5119_s11] sm:$0xff]   ;;  %v3471_v26 = vld [vmem:[%s5119_s11 + $0x8] sm:$0xff]   ;;  %s5136_s10 = sld [smem:[#allocation54_spill]]  ;;  %s2983_s0 = sshll.u32 %s4478_s22, 3 }
 0x172   : > { %s2985_s8 = sshll.u32 %s853_s27, 3  ;;  %s5128_s27 = sld [smem:[#allocation51_spill]] }
 0x173   : > { %s855_s6 = scalar_lea.vmem %s5116_s20, %s2985_s8  ;;  %s5120_s20 = sld [smem:[#allocation42_spill]] }
 0x174   : > { %v859_v4 = vld [vmem:[%s855_s6] sm:$0xff]  ;;  %3153 = vmatpush3.bf16.msra.mxu0 %v3464_v6  ;;  %s5134_s6 = sld [smem:[#allocation49_spill]]  ;;  %s3058_s18 = sshll.u32 %s5115_s4, 7 }
 0x175   : > { %v877_v5 = vpack.c.bf16 %v859_v4, %v859_v4  ;;  %3170 = vmatprep.subr.bf16.mxu0 %v3470_v25  ;;  %s5149_s29 = sld [smem:[#allocation56_spill]]  ;;  %s2693_s5 = scalar_lea.sflag [#allocation4], %s4478_s22 }
 0x176   : > { %p5150_p5 = scmp.ne.s32.totalorder %s5109_s24, 0 }
 0x177   : > { %3139 = vmatmul.mubr.msk.bf16.vlgmr.msra.gmra.mrb[0].mxu1 %vm897_vm1, %v877_v5  ;;  %3155 = vmatmul.mubr.msk.bf16.vlgmr.msra.gmra.mrb[0].mxu0 %vm897_vm1, %v877_v5 }
 0x178   : > { %3143 = vmatpush3.bf16.msra.mxu1 %v3463_v7  ;;  %3146 = vmatprep.mubr.msk.bf16.mxu1 %vm4020_vm0, %v5063_v0 }
 0x179   : > { %3144 = vmatprep.subr.bf16.mxu1 %v5063_v0  ;;  %3174 = vmatprep.mubr.msk.bf16.mxu0 %vm897_vm1, %v1071_v11  ;;  %v4570_v27 = vld [vmem:[%s5120_s20] sm:$0xff]   ;;  %v4578_v28 = vld [vmem:[%s5120_s20 + $0x8] sm:$0xff]  }
 0x17a   : > { %3171 = vmatpush3.bf16.msra.mxu0 %v3470_v25 }
 0x17b   : > { %3172 = vmatprep.subr.bf16.mxu0 %v3471_v26  ;;  %s4936_s1 = scalar_lea.hbm %s5149_s29, %s3058_s18 }
 0x17c   : > { %3145 = vmatpush3.bf16.msra.mxu1 %v3465_v10 }
 0x17d   : > { %3158 = vmatprep.subr.bf16.mxu1 %v3466_v12 }
 0x17e   : > { %3173 = vmatpush3.bf16.msra.mxu0 %v3471_v26 }
 0x17f   : > { %3147 = vmatmul.mubr.msk.bf16.vlgmr.msra.gmra.mrb[4].mxu1 %vm897_vm1, %v877_v5  ;;  %3194 = vmatprep.subr.bf16.mxu0 %v4570_v27 }
 0x180   : > { %3159 = vmatpush3.bf16.msra.mxu1 %v3466_v12  ;;  %3162 = vmatprep.mubr.msk.bf16.mxu1 %vm897_vm1, %v1071_v11 }
 0x181   : > { %3160 = vmatprep.subr.bf16.mxu1 %v3467_v13  ;;  %3175 = vmatmul.mubr.msk.bf16.vlgmr.msra.gmra.mrb[4].mxu0 %vm897_vm1, %v1072_v19 }
 0x182   : > { %3178 = vmatprep.mubr.msk.bf16.mxu0 %vm897_vm1, %v1073_v20  ;;  %3195 = vmatpush3.bf16.msra.mxu0 %v4570_v27 }
 0x183   : > { %3196 = vmatprep.subr.bf16.mxu0 %v4578_v28 }
 0x184   : > { %3161 = vmatpush3.bf16.msra.mxu1 %v3467_v13 }
 0x185   : > { %3182 = vmatprep.subr.bf16.mxu1 %v3468_v18 }
 0x186   : > { %3197 = vmatpush3.bf16.msra.mxu0 %v4578_v28 }
 0x187   : > { %3163 = vmatmul.mubr.msk.bf16.vlgmr.msra.gmra.mrb[8].mxu1 %vm897_vm1, %v1072_v19  ;;  %3216 = vmatprep.subr.bf16.mxu0 %v4570_v27 }
 0x188   : > { %3166 = vmatprep.mubr.msk.bf16.mxu1 %vm897_vm1, %v1073_v20  ;;  %3183 = vmatpush3.bf16.msra.mxu1 %v3468_v18 }
 0x189   : > { %3184 = vmatprep.subr.bf16.mxu1 %v3469_v21  ;;  %3179 = vmatmul.mubr.msk.bf16.gmra.mrb[8].mxu0 %vm897_vm1, %v1074_v24 }
 0x18c   : > { %3185 = vmatpush3.bf16.msra.mxu1 %v3469_v21 }
 0x18f   : > { %3167 = vmatmul.mubr.msk.bf16.gmra.mrb[12].mxu1 %vm897_vm1, %v1074_v24 }
 0x190   : > { %3186 = vmatprep.mubr.msk.bf16.mxu1 %vm897_vm1, %v1071_v11 }
 0x197   : > { %3187 = vmatmul.mubr.msk.bf16.vlgmr.msra.gmra.mrb[16].mxu1 %vm897_vm1, %v1072_v19 }
 0x198   : > { %3190 = vmatprep.mubr.msk.bf16.mxu1 %vm897_vm1, %v1073_v20 }
 0x19f   : > { %3191 = vmatmul.mubr.msk.bf16.gmra.mrb[20].mxu1 %vm897_vm1, %v1074_v24 }
 0x24a   : > { %v935_v32 = vpop.f32.mrb[0].mxu1  ;;  %v1061_v38 = vpop.f32.mrb[0].mxu0 }
 0x24b   : > { %v3140_v34 = vpop.f32.mrb[1].mxu1  ;;  %v1062_v40 = vadd.f32 %v2994_v33, %v1061_v38  ;;  %v3156_v41 = vpop.f32.mrb[1].mxu0  ;;  %v936_v47 = vadd.f32 %v2986_v42, %v935_v32 }
 0x24c   : > { %v938_v37 = vpop.f32.mrb[2].mxu1  ;;  %v1064_v43 = vpop.f32.mrb[2].mxu0 }
 0x24d   : > { %v3141_v39 = vpop.f32.mrb[3].mxu1  ;;  %v1347_v44 = vmul.f32 0.35355338, %v1062_v40  ;;  %v3157_v46 = vpop.f32.mrb[3].mxu0  ;;  %v4588_v57 = vmul.f32 0.35355338, %v936_v47 }
 0x24f   : > { %v1349_v48 = vcombine.high %v1347_v44, %v1347_v44  ;;  %v1356_v49 = vrot.slane %v1347_v44, %v4583_v45  ;;  %v1850_v5 = vrot.slane %v4588_v57, %v4583_v45  ;;  %v1843_v8 = vcombine.high %v4588_v57, %v4588_v57 }
 0x251   : > { %v1364_v51 = vcombine.high %v1356_v49, %v1356_v49  ;;  %v1372_v52 = vrot.slane %v1356_v49, %v4583_v45  ;;  %v1363_v55 = vrot.slane %v1349_v48, %v4583_v45  ;;  %v1858_v24 = vcombine.high %v1850_v5, %v1850_v5 }
 0x252   : > { %v998_v50 = vpop.f32.mrb[4].mxu1  ;;  %v4617_v32 = vrot.slane %v1850_v5, %v4583_v45  ;;  %v1857_v37 = vrot.slane %v1843_v8, %v4583_v45 }
 0x253   : > { %v3148_v54 = vpop.f32.mrb[5].mxu1  ;;  %v1386_v58 = vrot.slane %v1364_v51, %v4583_v45  ;;  %v1394_v60 = vcombine.high %v1372_v52, %v1372_v52  ;;  %v4591_v61 = vadd.f32 %v2990_v53, %v998_v50  ;;  %v1365_v1 = vcombine.high %v1363_v55, %v1363_v55 }
 0x254   : > { %v1001_v56 = vpop.f32.mrb[6].mxu1  ;;  %v1379_v3 = vrot.slane %v1363_v55, %v4583_v45  ;;  %v1401_v7 = vrot.slane %v1372_v52, %v4593_v62  ;;  %v1880_v47 = vrot.slane %v1858_v24, %v4583_v45  ;;  %v1895_v24 = vrot.slane %v4617_v32, %v4593_v62 }
 0x255   : > { %v3149_v59 = vpop.f32.mrb[7].mxu1  ;;  %v1396_v63 = vcombine.high %v1386_v58, %v1386_v58  ;;  %v1409_v4 = vrot.slane %v1394_v60, %v4593_v62  ;;  %v2368_v9 = vrot.slane %v4591_v61, %v4583_v45  ;;  %v1405_v13 = vrot.slane %v1386_v58, %v4593_v62 }
 0x256   : > { %v2361_v14 = vcombine.high %v4591_v61, %v4591_v61  ;;  %v1393_v17 = vrot.slane %v1365_v1, %v4583_v45  ;;  %v1395_v23 = vcombine.high %v1379_v3, %v1379_v3  ;;  %v1417_v55 = vrot.slane %v1379_v3, %v4593_v62 }
 0x257   : > { %v1413_v12 = vrot.slane %v1396_v63, %v4593_v62  ;;  %v4610_v18 = vrot.slane %v2368_v9, %v4583_v45  ;;  %v2376_v19 = vcombine.high %v2368_v9, %v2368_v9 }
 0x258   : > { %v2375_v34 = vrot.slane %v2361_v14, %v4583_v45  ;;  %v1397_v36 = vcombine.high %v1393_v17, %v1393_v17  ;;  %v1425_v46 = vrot.slane %v1395_v23, %v4593_v62  ;;  %v1421_v58 = vrot.slane %v1393_v17, %v4593_v62 }
 0x259   : > { %5122 = vst [vmem:[#allocation33_spill] sm:$0xff] %v4610_v18  ;;  %v2406_v29 = vcombine.high %v4610_v18, %v4610_v18  ;;  %v4620_v33 = vrot.slane %v2376_v19, %v4583_v45 }
 0x25a   : > { %v3164_v6 = vpop.f32.mrb[8].mxu1  ;;  %v4632_v42 = vrot.slane %v2375_v34, %v4583_v45  ;;  %v2377_v48 = vcombine.high %v2375_v34, %v2375_v34  ;;  %v1429_v1 = vrot.slane %v1397_v36, %v4593_v62 }
 0x25b   : > { %v1149_v10 = vadd.f32 %v3164_v6, %v2998_v2  ;;  %v1140_v11 = vpop.f32.mrb[9].mxu1  ;;  %5123 = vst [vmem:[#allocation34_spill] sm:$0xff] %v4620_v33  ;;  %v4625_v38 = vrot.slane %v2406_v29, %v4593_v62  ;;  %v2408_v40 = vcombine.high %v4620_v33, %v4620_v33 }
 0x25c   : > { %v1141_v15 = vadd.f32 %v2998_v2, %v1140_v11  ;;  %v3165_v16 = vpop.f32.mrb[10].mxu1  ;;  %5124 = vst [vmem:[#allocation35_spill] sm:$0xff] %v4632_v42  ;;  %v2407_v52 = vcombine.high %v4632_v42, %v4632_v42  ;;  %v4647_v59 = vrot.slane %v2377_v48, %v4583_v45 }
 0x25d   : > { %v1440_v20 = vmul.f32 %v1409_v4, %v1149_v10  ;;  %v1152_v21 = vadd.f32 %v3165_v16, %v2998_v2  ;;  %v1143_v22 = vpop.f32.mrb[11].mxu1  ;;  %v4637_v51 = vrot.slane %v2408_v40, %v4593_v62  ;;  %v1888_v10 = vcombine.high %v4617_v32, %v4617_v32 }
 0x25e   : > { %v1438_v25 = vmul.f32 %v1401_v7, %v1141_v15  ;;  %v1144_v26 = vadd.f32 %v2998_v2, %v1143_v22  ;;  %5126 = vst [vmem:[#allocation37_spill] sm:$0xff] %v4647_v59  ;;  %v4652_v5 = vrot.slane %v2407_v52, %v4593_v62  ;;  %v2409_v7 = vcombine.high %v4647_v59, %v4647_v59 }
 0x25f   : > { %v1441_v31 = vmul.f32 %v1413_v12, %v1152_v21  ;;  %5125 = vst [vmem:[#allocation36_spill] sm:$0xff] %v4637_v51  ;;  %v3012_v12 = vld [vmem:[%s5128_s27] ss:$0 sm:$0xff]  ;;  %v1859_v15 = vcombine.high %v1857_v37, %v1857_v37  ;;  %v1873_v22 = vrot.slane %v1857_v37, %v4583_v45  ;;  %v1899_v40 = vrot.slane %v1880_v47, %v4593_v62 }
 0x260   : > { %v1439_v35 = vmul.f32 %v1405_v13, %v1144_v26  ;;  %5127 = vst [vmem:[#allocation38_spill] sm:$0xff] %v4652_v5  ;;  %v4666_v13 = vrot.slane %v2409_v7, %v4593_v62 }
 0x261   : > { %v1447_v39 = vpack.c.bf16 %v1441_v31, %v1440_v20  ;;  %v1903_v20 = vrot.slane %v1888_v10, %v4593_v62  ;;  %v1887_v36 = vrot.slane %v1859_v15, %v4583_v45 }
 0x262   : > { %v1446_v43 = vpack.c.bf16 %v1439_v35, %v1438_v25  ;;  %v3168_v44 = vpop.f32.mrb[12].mxu1  ;;  %5129 = vst [vmem:[#allocation39_spill] sm:$0xff] %v4666_v13 }
 0x263   : > { %v1165_v49 = vadd.f32 %v3168_v44, %v2998_v2  ;;  %v1156_v50 = vpop.f32.mrb[13].mxu1  ;;  %v1891_v52 = vcombine.high %v1887_v36, %v1887_v36  ;;  %v1915_v15 = vrot.slane %v1887_v36, %v4593_v62 }
 0x264   : > { %v1157_v54 = vadd.f32 %v2998_v2, %v1156_v50  ;;  %v3169_v56 = vpop.f32.mrb[14].mxu1  ;;  %3198 = vmatprep.mubr.msk.bf16.mxu0 %vm897_vm1, %v1446_v43 }
 0x265   : > { %v1444_v60 = vmul.f32 %v1425_v46, %v1165_v49  ;;  %v1168_v63 = vadd.f32 %v3169_v56, %v2998_v2  ;;  %v1159_v4 = vpop.f32.mrb[15].mxu1  ;;  %3199 = vmatmul.mubr.msk.bf16.vlgmr.msra.gmra.mrb[12].mxu0 %vm897_vm1, %v1447_v39  ;;  %v1889_v46 = vcombine.high %v1873_v22, %v1873_v22 }
 0x266   : > { %v1442_v6 = vmul.f32 %v1417_v55, %v1157_v54  ;;  %v1160_v3 = vadd.f32 %v2998_v2, %v1159_v4  ;;  %3217 = vmatpush3.bf16.msra.mxu0 %v4570_v27  ;;  %v1890_v2 = vcombine.high %v1880_v47, %v1880_v47 }
 0x267   : > { %v1445_v9 = vmul.f32 %v1429_v1, %v1168_v63  ;;  %3218 = vmatprep.subr.bf16.mxu0 %v4578_v28  ;;  %v1911_v1 = vrot.slane %v1873_v22, %v4593_v62 }
 0x268   : > { %v1443_v11 = vmul.f32 %v1421_v58, %v1160_v3  ;;  %v1907_v26 = vrot.slane %v1890_v2, %v4593_v62  ;;  %v1919_v58 = vrot.slane %v1889_v46, %v4593_v62 }
 0x269   : > { %v1449_v14 = vpack.c.bf16 %v1445_v9, %v1444_v60  ;;  %v1923_v9 = vrot.slane %v1891_v52, %v4593_v62 }
 0x26a   : > { %v1448_v16 = vpack.c.bf16 %v1443_v11, %v1442_v6  ;;  %v3188_v17 = vpop.f32.mrb[16].mxu1  ;;  %3219 = vmatpush3.bf16.msra.mxu0 %v4578_v28 }
 0x26b   : > { %v1325_v19 = vadd.f32 %v3188_v17, %v3012_v12  ;;  %v1316_v21 = vpop.f32.mrb[17].mxu1 }
 0x26c   : > { %v1317_v23 = vadd.f32 %v3012_v12, %v1316_v21  ;;  %v3189_v25 = vpop.f32.mrb[18].mxu1  ;;  %3202 = vmatprep.mubr.msk.bf16.mxu0 %vm897_vm1, %v1448_v16 }
 0x26d   : > { %v1934_v29 = vmul.f32 %v1903_v20, %v1325_v19  ;;  %v4676_v31 = vmul.f32 %v4588_v57, %v1325_v19  ;;  %v1328_v34 = vadd.f32 %v3189_v25, %v3012_v12  ;;  %v1319_v35 = vpop.f32.mrb[19].mxu1  ;;  %3203 = vmatmul.mubr.msk.bf16.gmra.mrb[16].mxu0 %vm897_vm1, %v1449_v14 }
 0x26e   : > { %v1932_v37 = vmul.f32 %v1895_v24, %v1317_v23  ;;  %v4681_v39 = vmul.f32 %v4588_v57, %v1317_v23  ;;  %v1320_v32 = vadd.f32 %v3012_v12, %v1319_v35 }
 0x26f   : > { %v1935_v43 = vmul.f32 %v1907_v26, %v1328_v34  ;;  %v4685_v44 = vmul.f32 %v4588_v57, %v1328_v34 }
 0x270   : > { %v1933_v48 = vmul.f32 %v1899_v40, %v1320_v32  ;;  %v4688_v49 = vmul.f32 %v4588_v57, %v1320_v32 }
 0x271   : > { %v1949_v50 = vpack.c.bf16 %v1935_v43, %v1934_v29 }
 0x272   : > { %v1948_v54 = vpack.c.bf16 %v1933_v48, %v1932_v37  ;;  %v3192_v56 = vpop.f32.mrb[20].mxu1  ;;  %v4734_v37 = vld [vmem:[#allocation5] sm:$0x3] }
 0x273   : > { %v1341_v47 = vadd.f32 %v3192_v56, %v3012_v12  ;;  %v1332_v60 = vpop.f32.mrb[21].mxu1  ;;  %3280 = vmatprep.subr.msk.bf16.mxu1 %vm1708_vm2, %v4734_v37  ;;  %v4740_v32 = vsel %vm1708_vm2, %v4734_v37, 0  ;;  %3281 = vmatprep.subr.msk.bf16.mxu0 %vm1708_vm2, %v4734_v37 }
 0x274   : > { %v1333_v63 = vadd.f32 %v3012_v12, %v1332_v60  ;;  %v3193_v4 = vpop.f32.mrb[22].mxu1  ;;  %3220 = vmatprep.mubr.msk.bf16.mxu0 %vm897_vm1, %v1948_v54  ;;  %3207 = vmatpush3.bf16.msra.mxu1 %v4740_v32 }
 0x275   : > { %v1938_v6 = vmul.f32 %v1919_v58, %v1341_v47  ;;  %v4698_v3 = vmul.f32 %v4588_v57, %v1341_v47  ;;  %v1344_v7 = vadd.f32 %v3193_v4, %v3012_v12  ;;  %v1335_v10 = vpop.f32.mrb[23].mxu1  ;;  %3221 = vmatmul.mubr.msk.bf16.vlgmr.msra.gmra.mrb[20].mxu0 %vm897_vm1, %v1949_v50  ;;  %3228 = vmatprep.subr.bf16.mxu1 %v4570_v27 }
 0x276   : > { %v1936_v11 = vmul.f32 %v1911_v1, %v1333_v63  ;;  %v4703_v2 = vmul.f32 %v4588_v57, %v1333_v63  ;;  %v1336_v14 = vadd.f32 %v3012_v12, %v1335_v10  ;;  %v4718_v12 = vpop.f32.mrb[4].mxu0  ;;  %3241 = vmatpush3.bf16.msra.mxu0 %v4740_v32 }
 0x277   : > { %v1939_v16 = vmul.f32 %v1923_v9, %v1344_v7  ;;  %v4707_v17 = vmul.f32 %v4588_v57, %v1344_v7  ;;  %v4720_v25 = vpop.f32.mrb[5].mxu0  ;;  %3260 = vmatprep.subr.bf16.mxu0 %v5063_v0 }
 0x278   : > { %v1937_v19 = vmul.f32 %v1915_v15, %v1336_v14  ;;  %v4710_v20 = vmul.f32 %v4588_v57, %v1336_v14  ;;  %v4722_v26 = vpop.f32.mrb[6].mxu0 }
 0x279   : > { %v1951_v21 = vpack.c.bf16 %v1939_v16, %v1938_v6  ;;  %v4724_v57 = vpop.f32.mrb[7].mxu0 }
 0x27a   : > { %v1950_v23 = vpack.c.bf16 %v1937_v19, %v1936_v11  ;;  %v4726_v29 = vpop.f32.mrb[8].mxu0 }
 0x27b   : > { %v4728_v34 = vpop.f32.mrb[9].mxu0 }
 0x27c   : > { %3224 = vmatprep.mubr.msk.bf16.mxu0 %vm897_vm1, %v1950_v23  ;;  %v4730_v35 = vpop.f32.mrb[10].mxu0 }
 0x27d   : > { %3225 = vmatmul.mubr.msk.bf16.gmra.mrb[24].mxu0 %vm897_vm1, %v1951_v21  ;;  %v4732_v36 = vpop.f32.mrb[11].mxu0 }
 0x338   : > { %v3200_v40 = vpop.f32.mrb[12].mxu0 }
 0x339   : > { %v1554_v43 = vsel %vm1539_vm3, %v3200_v40, -inf  ;;  %v1508_v46 = vpop.f32.mrb[13].mxu0 }
 0x33a   : > { %v1555_v48 = vrot.slane %v1554_v43, 4  ;;  %v1540_v50 = vsel %vm1539_vm3, %v1508_v46, -inf  ;;  %v3201_v52 = vpop.f32.mrb[14].mxu0 }
 0x33b   : > { %v1541_v54 = vrot.slane %v1540_v50, 4  ;;  %v1561_v56 = vsel %vm1539_vm3, %v3201_v52, -inf  ;;  %v1511_v47 = vpop.f32.mrb[15].mxu0 }
 0x33c   : > { %v1556_v58 = vmax.f32 %v1554_v43, %v1555_v48  ;;  %v1562_v60 = vrot.slane %v1561_v56, 4  ;;  %v1547_v63 = vsel %vm1539_vm3, %v1511_v47, -inf }
 0x33d   : > { %v1542_v1 = vmax.f32 %v1540_v50, %v1541_v54  ;;  %v1548_v4 = vrot.slane %v1547_v63, 4 }
 0x33e   : > { %v1557_v6 = vrot.slane %v1556_v58, 2  ;;  %v1563_v7 = vmax.f32 %v1561_v56, %v1562_v60 }
 0x33f   : > { %v1543_v9 = vrot.slane %v1542_v1, 2  ;;  %v1549_v10 = vmax.f32 %v1547_v63, %v1548_v4 }
 0x340   : > { %v1558_v11 = vmax.f32 %v1556_v58, %v1557_v6  ;;  %v1564_v14 = vrot.slane %v1563_v7, 2  ;;  %v3204_v15 = vpop.f32.mrb[16].mxu0 }
 0x341   : > { %v1544_v16 = vmax.f32 %v1542_v1, %v1543_v9  ;;  %v1550_v19 = vrot.slane %v1549_v10, 2  ;;  %v1582_v21 = vsel %vm1539_vm3, %v3204_v15, -inf  ;;  %v1524_v23 = vpop.f32.mrb[17].mxu0 }
 0x342   : > { %v1559_v8 = vrot.slane %v1558_v11, 1  ;;  %v1565_v53 = vmax.f32 %v1563_v7, %v1564_v14  ;;  %v1583_v43 = vrot.slane %v1582_v21, 4  ;;  %v1568_v48 = vsel %vm1539_vm3, %v1524_v23, -inf  ;;  %v3205_v41 = vpop.f32.mrb[18].mxu0 }
 0x343   : > { %v1545_v50 = vrot.slane %v1544_v16, 1  ;;  %v1551_v54 = vmax.f32 %v1549_v10, %v1550_v19  ;;  %v1569_v30 = vrot.slane %v1568_v48, 4  ;;  %v1589_v56 = vsel %vm1539_vm3, %v3205_v41, -inf  ;;  %v4755_v60 = vpop.f32.mrb[19].mxu0 }
 0x344   : > { %v1560_v58 = vmax.f32 %v1558_v11, %v1559_v8  ;;  %v1566_v63 = vrot.slane %v1565_v53, 1  ;;  %v1584_v1 = vmax.f32 %v1582_v21, %v1583_v43  ;;  %v1590_v4 = vrot.slane %v1589_v56, 4 }
 0x345   : > { %v1546_v6 = vmax.f32 %v1544_v16, %v1545_v50  ;;  %v1552_v9 = vrot.slane %v1551_v54, 1  ;;  %v1570_v0 = vmax.f32 %v1568_v48, %v1569_v30  ;;  %v1575_v7 = vsel %vm1539_vm3, %v4755_v60, -inf }
 0x346   : > { %v1598_v14 = vsub.f32 %v3200_v40, %v1560_v58  ;;  %v1567_v22 = vmax.f32 %v1565_v53, %v1566_v63  ;;  %v1585_v24 = vrot.slane %v1584_v1, 2  ;;  %v1591_v45 = vmax.f32 %v1589_v56, %v1590_v4 }
 0x347   : > { %v1596_v10 = vsub.f32 %v1508_v46, %v1546_v6  ;;  %v1553_v19 = vmax.f32 %v1551_v54, %v1552_v9  ;;  %v1571_v55 = vrot.slane %v1570_v0, 2  ;;  %v1576_v59 = vrot.slane %v1575_v7, 4 }
 0x348   : > { %v1608_v13 = vmul.f32 1.442695, %v1598_v14  ;;  %v1599_v42 = vsub.f32 %v3201_v52, %v1567_v22  ;;  %v1586_v8 = vmax.f32 %v1584_v1, %v1585_v24  ;;  %v1592_v11 = vrot.slane %v1591_v45, 2  ;;  %v4759_v21 = vpop.f32.mrb[20].mxu0 }
 0x349   : > { %v1604_v16 = vmul.f32 1.442695, %v1596_v10  ;;  %v1597_v43 = vsub.f32 %v1511_v47, %v1553_v19  ;;  %v1572_v30 = vmax.f32 %v1570_v0, %v1571_v55  ;;  %v1577_v48 = vmax.f32 %v1575_v7, %v1576_v59  ;;  %v4761_v50 = vpop.f32.mrb[21].mxu0 }
 0x34a   : > { %3478 = vpow2.f32 %v1608_v13  ;;  %v1610_v53 = vmul.f32 1.442695, %v1599_v42  ;;  %v1587_v40 = vrot.slane %v1586_v8, 1  ;;  %v1593_v56 = vmax.f32 %v1591_v45, %v1592_v11  ;;  %v4763_v46 = vpop.f32.mrb[22].mxu0 }
 0x34b   : > { %3480 = vpow2.f32 %v1604_v16  ;;  %v1606_v54 = vmul.f32 1.442695, %v1597_v43  ;;  %v1573_v58 = vrot.slane %v1572_v30, 1  ;;  %v1578_v22 = vrot.slane %v1577_v48, 2  ;;  %v4765_v24 = vpop.f32.mrb[23].mxu0 }
 0x34c   : > { %3482 = vpow2.f32 %v1610_v53  ;;  %v1588_v52 = vmax.f32 %v1586_v8, %v1587_v40  ;;  %v1594_v63 = vrot.slane %v1593_v56, 1 }
 0x34d   : > { %3484 = vpow2.f32 %v1606_v54  ;;  %v1574_v0 = vmax.f32 %v1572_v30, %v1573_v58  ;;  %v1579_v59 = vmax.f32 %v1577_v48, %v1578_v22 }
 0x34e   : > { %v1602_v55 = vsub.f32 %v3204_v15, %v1588_v52  ;;  %v1595_v47 = vmax.f32 %v1593_v56, %v1594_v63 }
 0x34f   : > { %v1600_v13 = vsub.f32 %v1524_v23, %v1574_v0  ;;  %v1580_v42 = vrot.slane %v1579_v59, 1 }
 0x350   : > { %v1616_v1 = vmul.f32 1.442695, %v1602_v55  ;;  %v1603_v45 = vsub.f32 %v3205_v41, %v1595_v47  ;;  %v4767_v4 = vpop.f32.mrb[24].mxu0 }
 0x351   : > { %v1612_v6 = vmul.f32 1.442695, %v1600_v13  ;;  %v1581_v9 = vmax.f32 %v1579_v59, %v1580_v42  ;;  %v4769_v7 = vpop.f32.mrb[25].mxu0 }
 0x352   : > { %3486 = vpow2.f32 %v1616_v1  ;;  %v1618_v14 = vmul.f32 1.442695, %v1603_v45  ;;  %v4771_v10 = vpop.f32.mrb[26].mxu0 }
 0x353   : > { %3488 = vpow2.f32 %v1612_v6  ;;  %v1601_v19 = vsub.f32 %v4755_v60, %v1581_v9  ;;  %v4774_v8 = vpop.f32.mrb[27].mxu0 }
 0x354   : > { %v4776_v15 = vpop.eup %3478  ;;  %3490 = vpow2.f32 %v1618_v14 }
 0x355   : > { %v4778_v23 = vpop.eup %3480  ;;  %v1634_v41 = vsel %vm1539_vm3, %v4776_v15, 0.0  ;;  %v1614_v11 = vmul.f32 1.442695, %v1601_v19 }
 0x356   : > { %v4782_v16 = vpop.eup %3482  ;;  %v1635_v43 = vrot.slane %v1634_v41, 4  ;;  %v1620_v30 = vsel %vm1539_vm3, %v4778_v23, 0.0 }
 0x357   : > { %v4786_v48 = vpop.eup %3484  ;;  %v1621_v60 = vrot.slane %v1620_v30, 4  ;;  %v1641_v53 = vsel %vm1539_vm3, %v4782_v16, 0.0  ;;  %3492 = vpow2.f32 %v1614_v11 }
 0x358   : > { %v1636_v40 = vadd.f32 %v1635_v43, %v1634_v41  ;;  %v1642_v56 = vrot.slane %v1641_v53, 4  ;;  %v1627_v54 = vsel %vm1539_vm3, %v4786_v48, 0.0 }
 0x359   : > { %v1622_v58 = vadd.f32 %v1621_v60, %v1620_v30  ;;  %v1628_v22 = vrot.slane %v1627_v54, 4 }
 0x35a   : > { %v1637_v52 = vrot.slane %v1636_v40, 2  ;;  %v1643_v63 = vadd.f32 %v1642_v56, %v1641_v53 }
 0x35b   : > { %v1623_v0 = vrot.slane %v1622_v58, 2  ;;  %v1629_v59 = vadd.f32 %v1628_v22, %v1627_v54 }
 0x35c   : > { %v4792_v55 = vpop.eup %3486  ;;  %v1638_v47 = vadd.f32 %v1637_v52, %v1636_v40  ;;  %v1644_v13 = vrot.slane %v1643_v63, 2 }
 0x35d   : > { %v4794_v42 = vpop.eup %3488  ;;  %v1624_v1 = vadd.f32 %v1623_v0, %v1622_v58  ;;  %v1630_v45 = vrot.slane %v1629_v59, 2  ;;  %v1662_v6 = vsel %vm1539_vm3, %v4792_v55, 0.0 }
 0x35e   : > { %v4798_v9 = vpop.eup %3490  ;;  %v1639_v14 = vrot.slane %v1638_v47, 1  ;;  %v1645_v19 = vadd.f32 %v1644_v13, %v1643_v63  ;;  %v1663_v41 = vrot.slane %v1662_v6, 4  ;;  %v1648_v11 = vsel %vm1539_vm3, %v4794_v42, 0.0 }
 0x35f   : > { %v1625_v43 = vrot.slane %v1624_v1, 1  ;;  %v1631_v30 = vadd.f32 %v1630_v45, %v1629_v59  ;;  %v1649_v60 = vrot.slane %v1648_v11, 4  ;;  %v1669_v53 = vsel %vm1539_vm3, %v4798_v9, 0.0 }
 0x360   : > { %v1640_v40 = vadd.f32 %v1639_v14, %v1638_v47  ;;  %v1646_v56 = vrot.slane %v1645_v19, 1  ;;  %v1664_v54 = vadd.f32 %v1663_v41, %v1662_v6  ;;  %v1670_v58 = vrot.slane %v1669_v53, 4 }
 0x361   : > { %v3493_v22 = vpop.eup %3492  ;;  %v1626_v52 = vadd.f32 %v1625_v43, %v1624_v1  ;;  %v1632_v0 = vrot.slane %v1631_v30, 1  ;;  %v1650_v5 = vadd.f32 %v1649_v60, %v1648_v11 }
 0x362   : > { %3494 = vrcp.f32 %v1640_v40  ;;  %v1647_v63 = vadd.f32 %v1646_v56, %v1645_v19  ;;  %v1665_v13 = vrot.slane %v1664_v54, 2  ;;  %v1671_v33 = vadd.f32 %v1670_v58, %v1669_v53 }
 0x363   : > { %3496 = vrcp.f32 %v1626_v52  ;;  %v1633_v51 = vadd.f32 %v1632_v0, %v1631_v30  ;;  %v1651_v62 = vrot.slane %v1650_v5, 2  ;;  %v1655_v59 = vsel %vm1539_vm3, %v3493_v22, 0.0 }
 0x364   : > { %3498 = vrcp.f32 %v1647_v63  ;;  %v1666_v45 = vadd.f32 %v1665_v13, %v1664_v54  ;;  %v1672_v18 = vrot.slane %v1671_v33, 2  ;;  %v1656_v47 = vrot.slane %v1655_v59, 4 }
 0x365   : > { %3500 = vrcp.f32 %v1633_v51  ;;  %v1652_v6 = vadd.f32 %v1651_v62, %v1650_v5 }
 0x366   : > { %v1667_v14 = vrot.slane %v1666_v45, 1  ;;  %v1673_v41 = vadd.f32 %v1672_v18, %v1671_v33  ;;  %v1657_v1 = vadd.f32 %v1656_v47, %v1655_v59 }
 0x367   : > { %v1653_v43 = vrot.slane %v1652_v6, 1 }
 0x368   : > { %v1668_v11 = vadd.f32 %v1667_v14, %v1666_v45  ;;  %v1674_v60 = vrot.slane %v1673_v41, 1  ;;  %v1658_v19 = vrot.slane %v1657_v1, 2 }
 0x369   : > { %v1654_v53 = vadd.f32 %v1653_v43, %v1652_v6 }
 0x36a   : > { %3502 = vrcp.f32 %v1668_v11  ;;  %v1675_v40 = vadd.f32 %v1674_v60, %v1673_v41  ;;  %v1659_v30 = vadd.f32 %v1658_v19, %v1657_v1 }
 0x36c   : > { %v3495_v56 = vpop.eup %3494  ;;  %3504 = vrcp.f32 %v1675_v40  ;;  %v1660_v58 = vrot.slane %v1659_v30, 1 }
 0x36d   : > { %v3497_v52 = vpop.eup %3496  ;;  %3506 = vrcp.f32 %v1654_v53  ;;  %v1686_v62 = vmul.f32 %v3495_v56, %v4776_v15 }
 0x36e   : > { %v3499_v54 = vpop.eup %3498  ;;  %v1661_v0 = vadd.f32 %v1660_v58, %v1659_v30  ;;  %v1684_v33 = vmul.f32 %v3497_v52, %v4778_v23 }
 0x36f   : > { %v3501_v51 = vpop.eup %3500  ;;  %v1687_v18 = vmul.f32 %v3499_v54, %v4782_v16 }
 0x370   : > { %3508 = vrcp.f32 %v1661_v0  ;;  %v1685_v5 = vmul.f32 %v3501_v51, %v4786_v48 }
 0x371   : > { %v1693_v63 = vpack.c.bf16 %v1687_v18, %v1686_v62 }
 0x372   : > { %v1692_v13 = vpack.c.bf16 %v1685_v5, %v1684_v33 }
 0x374   : > { %v3503_v59 = vpop.eup %3502  ;;  %3208 = vmatprep.mubr.msk.bf16.mxu1 %vm1539_vm3, %v1692_v13 }
 0x375   : > { %3209 = vmatmul.mubr.msk.bf16.vlgmr.msra.gmra.mrb[24].mxu1 %vm1539_vm3, %v1693_v63  ;;  %v1690_v47 = vmul.f32 %v3503_v59, %v4792_v55  ;;  %v5131_v55 = vpack.c.bf16 %v4685_v44, %v4676_v31 }
 0x376   : > { %v3505_v45 = vpop.eup %3504  ;;  %3229 = vmatpush3.bf16.msra.mxu1 %v4570_v27  ;;  %v5130_v27 = vpack.c.bf16 %v4688_v49, %v4681_v39  ;;  %v3005_v39 = vld [vmem:[%s5134_s6] ss:$0 sm:$0xff]  ;;  %s844_s6 = scalar_lea.vmem [#allocation20], %s2983_s0 }
 0x377   : > { %v1691_v15 = vmul.f32 %v3505_v45, %v4798_v9  ;;  %3230 = vmatprep.subr.bf16.mxu1 %v4578_v28  ;;  %v3507_v16 = vpop.eup %3506  ;;  %v1237_v31 = vadd.f32 %v4718_v12, %v3005_v39  ;;  %v1229_v44 = vadd.f32 %v3005_v39, %v4720_v25  ;;  %v1253_v54 = vadd.f32 %v4726_v29, %v3005_v39  ;;  %s2712_s19 = sshll.u32 %s844_s6, 4  ;;  %s2713_s19 = int_to_ptr.vmem [resolvable:$true] %s2712_s19 }
 0x378   : > { %v1688_v48 = vmul.f32 %v3507_v16, %v4794_v42  ;;  %v1245_v0 = vadd.f32 %v3005_v39, %v4728_v34  ;;  %v1256_v18 = vadd.f32 %v4730_v35, %v3005_v39  ;;  %v1248_v33 = vadd.f32 %v3005_v39, %v4732_v36  ;;  %s3868_s7 = scalar_lea.vmem %s2713_s19, 128 }
 0x379   : > { %v1695_v23 = vpack.c.bf16 %v1691_v15, %v1690_v47  ;;  %p3869_p0 = scmp.ne.s32.totalorder %s2713_s19, %s3868_s7 }
 0x37a   : > { %v3509_v6 = vpop.eup %3508  ;;  %3231 = vmatpush3.bf16.msra.mxu1 %v4578_v28  ;;  %v5132_v28 = vpack.c.bf16 %v4710_v20, %v4703_v2  ;;  %v1240_v2 = vadd.f32 %v4722_v26, %v3005_v39 }
 0x37b   : > { %v1689_v14 = vmul.f32 %v3509_v6, %v3493_v22  ;;  %3282 = vmatprep.subr.msk.bf16.mxu1 %vm1708_vm2, %v4734_v37  ;;  %v5133_v37 = vpack.c.bf16 %v4707_v17, %v4698_v3  ;;  %p3870_p1 = pnand %p3869_p0, %p5150_p5 }
 0x37d   : > { %v1694_v41 = vpack.c.bf16 %v1689_v14, %v1688_v48  ;;  %p3871_p10 = pneg %p3870_p1 }
 0x37f   : > { %3212 = vmatprep.mubr.msk.bf16.mxu1 %vm1539_vm3, %v1694_v41 }
 0x380   : > { %3213 = vmatmul.mubr.msk.bf16.gmra.mrb[28].mxu1 %vm1539_vm3, %v1695_v23 }
 0x381   : > { %3232 = vmatprep.mubr.msk.bf16.mxu1 %vm897_vm1, %v5130_v27 }
 0x388   : > { %3233 = vmatmul.mubr.msk.bf16.vlgmr.msra.gmra.mrb[32].mxu1 %vm897_vm1, %v5131_v55 }
 0x389   : > { %3236 = vmatprep.mubr.msk.bf16.mxu1 %vm897_vm1, %v5132_v28  ;;  %3251 = vmatpush3.bf16.msra.mxu1 %v4740_v32  ;;  %v1232_v32 = vadd.f32 %v3005_v39, %v4724_v57 }
 0x390   : > { %3237 = vmatmul.mubr.msk.bf16.gmra.mrb[36].mxu1 %vm897_vm1, %v5133_v37 }
 0x448   : > { %v3210_v49 = vpop.f32.mrb[24].mxu1 }
 0x449   : > { %v1779_v20 = vmul.f32 %v3210_v49, %v1237_v31  ;;  %v1746_v42 = vpop.f32.mrb[25].mxu1 }
 0x44a   : > { %v1777_v9 = vmul.f32 %v1746_v42, %v1229_v44  ;;  %v3211_v22 = vpop.f32.mrb[26].mxu1 }
 0x44b   : > { %v1799_v3 = vsel %vm897_vm1, %v1779_v20, 0.0  ;;  %v1780_v17 = vmul.f32 %v3211_v22, %v1240_v2  ;;  %v1749_v1 = vpop.f32.mrb[27].mxu1 }
 0x44c   : > { %v1800_v43 = vrot.slane %v1799_v3, 4  ;;  %v1785_v11 = vsel %vm897_vm1, %v1777_v9, 0.0  ;;  %v1778_v60 = vmul.f32 %v1749_v1, %v1232_v32 }
 0x44d   : > { %v1786_v12 = vrot.slane %v1785_v11, 4  ;;  %v1806_v25 = vsel %vm897_vm1, %v1780_v17, 0.0 }
 0x44e   : > { %v1801_v19 = vadd.f32 %v1800_v43, %v1799_v3  ;;  %v1807_v53 = vrot.slane %v1806_v25, 4  ;;  %v1792_v26 = vsel %vm897_vm1, %v1778_v60, 0.0 }
 0x44f   : > { %v1787_v40 = vadd.f32 %v1786_v12, %v1785_v11  ;;  %v1793_v30 = vrot.slane %v1792_v26, 4 }
 0x450   : > { %v1802_v57 = vrot.slane %v1801_v19, 2  ;;  %v1808_v56 = vadd.f32 %v1807_v53, %v1806_v25 }
 0x451   : > { %v1788_v58 = vrot.slane %v1787_v40, 2  ;;  %v1794_v52 = vadd.f32 %v1793_v30, %v1792_v26 }
 0x452   : > { %v1803_v51 = vadd.f32 %v1802_v57, %v1801_v19  ;;  %v1809_v62 = vrot.slane %v1808_v56, 2 }
 0x453   : > { %v1789_v5 = vadd.f32 %v1788_v58, %v1787_v40  ;;  %v1795_v63 = vrot.slane %v1794_v52, 2  ;;  %v3214_v13 = vpop.f32.mrb[28].mxu1 }
 0x454   : > { %v1804_v59 = vrot.slane %v1803_v51, 1  ;;  %v1810_v45 = vadd.f32 %v1809_v62, %v1808_v56  ;;  %v1783_v47 = vmul.f32 %v3214_v13, %v1253_v54  ;;  %v1762_v15 = vpop.f32.mrb[29].mxu1 }
 0x455   : > { %v1790_v16 = vrot.slane %v1789_v5, 1  ;;  %v1796_v23 = vadd.f32 %v1795_v63, %v1794_v52  ;;  %v1781_v29 = vmul.f32 %v1762_v15, %v1245_v0  ;;  %v3215_v6 = vpop.f32.mrb[30].mxu1 }
 0x456   : > { %v1805_v34 = vadd.f32 %v1804_v59, %v1803_v51  ;;  %v1811_v48 = vrot.slane %v1810_v45, 1  ;;  %v1827_v14 = vsel %vm897_vm1, %v1783_v47, 0.0  ;;  %v1784_v35 = vmul.f32 %v3215_v6, %v1256_v18  ;;  %v1765_v36 = vpop.f32.mrb[31].mxu1 }
 0x457   : > { %v1791_v41 = vadd.f32 %v1790_v16, %v1789_v5  ;;  %v1797_v27 = vrot.slane %v1796_v23, 1  ;;  %v1828_v55 = vrot.slane %v1827_v14, 4  ;;  %v1813_v28 = vsel %vm897_vm1, %v1781_v29, 0.0 }
 0x458   : > { %v2480_v37 = vpack.c.bf16 %v1805_v34, %v1805_v34  ;;  %v1812_v39 = vadd.f32 %v1811_v48, %v1810_v45  ;;  %v1814_v31 = vrot.slane %v1813_v28, 4  ;;  %v1834_v44 = vsel %vm897_vm1, %v1784_v35, 0.0 }
 0x459   : > { %v2478_v49 = vpack.c.bf16 %v1791_v41, %v1791_v41  ;;  %v1798_v2 = vadd.f32 %v1797_v27, %v1796_v23  ;;  %v1829_v20 = vadd.f32 %v1828_v55, %v1827_v14  ;;  %v1835_v42 = vrot.slane %v1834_v44, 4 }
 0x45a   : > { %v2503_v32 = vunpack.c.l.b16 %v2480_v37  ;;  %v2481_v9 = vpack.c.bf16 %v1812_v39, %v1812_v39  ;;  %v1815_v22 = vadd.f32 %v1814_v31, %v1813_v28  ;;  %v1782_v3 = vmul.f32 %v1765_v36, %v1248_v33 }
 0x45b   : > { %v2501_v17 = vunpack.c.l.b16 %v2478_v49  ;;  %v2479_v1 = vpack.c.bf16 %v1798_v2, %v1798_v2  ;;  %v1830_v43 = vrot.slane %v1829_v20, 2  ;;  %v1836_v11 = vadd.f32 %v1835_v42, %v1834_v44  ;;  %v3234_v60 = vpop.f32.mrb[32].mxu1 }
 0x45c   : > { %v2504_v12 = vunpack.c.l.b16 %v2481_v9  ;;  %v1816_v25 = vrot.slane %v1815_v22, 2  ;;  %v1820_v19 = vsel %vm897_vm1, %v1782_v3, 0.0  ;;  %v2112_v53 = vmax.f32 %v4759_v21, %v3234_v60  ;;  %v2079_v26 = vpop.f32.mrb[33].mxu1 }
 0x45d   : > { %v2502_v40 = vunpack.c.l.b16 %v2479_v1  ;;  %v1831_v30 = vadd.f32 %v1830_v43, %v1829_v20  ;;  %v1837_v57 = vrot.slane %v1836_v11, 2  ;;  %v1821_v56 = vrot.slane %v1820_v19, 4  ;;  %v3235_v58 = vpop.f32.mrb[34].mxu1 }
 0x45e   : > { %v1817_v52 = vadd.f32 %v1816_v25, %v1815_v22  ;;  %v2120_v54 = vsub.f32 %v4759_v21, %v2112_v53  ;;  %v2144_v0 = vsub.f32 %v3234_v60, %v2112_v53  ;;  %v2110_v51 = vmax.f32 %v4761_v50, %v2079_v26  ;;  %v2082_v62 = vpop.f32.mrb[35].mxu1 }
 0x45f   : > { %v2510_v18 = vsel %vm2509_vm4, %v2502_v40, %v2501_v17  ;;  %v1832_v33 = vrot.slane %v1831_v30, 1  ;;  %v1838_v5 = vadd.f32 %v1837_v57, %v1836_v11  ;;  %v1822_v63 = vadd.f32 %v1821_v56, %v1820_v19 }
 0x460   : > { %v2512_v13 = vsel %vm2511_vm5, %v2503_v32, %v2510_v18  ;;  %v1818_v59 = vrot.slane %v1817_v52, 1  ;;  %v2130_v45 = vmul.f32 1.442695, %v2120_v54  ;;  %v2154_v47 = vmul.f32 1.442695, %v2144_v0 }
 0x461   : > { %v1833_v15 = vadd.f32 %v1832_v33, %v1831_v30  ;;  %v2514_v16 = vsel %vm2513_vm6, %v2504_v12, %v2512_v13  ;;  %v1839_v23 = vrot.slane %v1838_v5, 1  ;;  %v1823_v29 = vrot.slane %v1822_v63, 2 }
 0x462   : > { %v1819_v21 = vadd.f32 %v1818_v59, %v1817_v52  ;;  %3510 = vpow2.f32 %v2130_v45  ;;  %v2118_v6 = vsub.f32 %v4761_v50, %v2110_v51  ;;  %v2142_v34 = vsub.f32 %v2079_v26, %v2110_v51 }
 0x463   : > { %v2484_v48 = vpack.c.bf16 %v1833_v15, %v1833_v15  ;;  %v1840_v14 = vadd.f32 %v1839_v23, %v1838_v5  ;;  %v1824_v35 = vadd.f32 %v1823_v29, %v1822_v63  ;;  %3512 = vpow2.f32 %v2154_v47  ;;  %v3238_v36 = vpop.f32.mrb[36].mxu1 }
 0x464   : > { %v2482_v41 = vpack.c.bf16 %v1819_v21, %v1819_v21  ;;  %v2126_v27 = vmul.f32 1.442695, %v2118_v6  ;;  %v2150_v55 = vmul.f32 1.442695, %v2142_v34  ;;  %v2113_v28 = vmax.f32 %v4763_v46, %v3235_v58  ;;  %v2095_v37 = vpop.f32.mrb[37].mxu1 }
 0x465   : > { %v2507_v39 = vunpack.c.l.b16 %v2484_v48  ;;  %v2485_v31 = vpack.c.bf16 %v1840_v14, %v1840_v14  ;;  %v1825_v44 = vrot.slane %v1824_v35, 1  ;;  %v2111_v49 = vmax.f32 %v4765_v24, %v2082_v62  ;;  %v3239_v50 = vpop.f32.mrb[38].mxu1 }
 0x466   : > { %v2505_v2 = vunpack.c.l.b16 %v2482_v41  ;;  %3514 = vpow2.f32 %v2126_v27  ;;  %v2121_v20 = vsub.f32 %v4763_v46, %v2113_v28  ;;  %v2145_v42 = vsub.f32 %v3235_v58, %v2113_v28  ;;  %v2098_v32 = vpop.f32.mrb[39].mxu1 }
 0x467   : > { %v2508_v9 = vunpack.c.l.b16 %v2485_v31  ;;  %v1826_v22 = vadd.f32 %v1825_v44, %v1824_v35  ;;  %3516 = vpow2.f32 %v2150_v55  ;;  %v2119_v3 = vsub.f32 %v4765_v24, %v2111_v49 }
 0x468   : > { %v2516_v17 = vsel %vm2515_vm7, %v2505_v2, %v2514_v16  ;;  %v2132_v1 = vmul.f32 1.442695, %v2121_v20  ;;  %v2156_v43 = vmul.f32 1.442695, %v2145_v42  ;;  %v2143_v11 = vsub.f32 %v2082_v62, %v2111_v49 }
 0x469   : > { %v2483_v60 = vpack.c.bf16 %v1826_v22, %v1826_v22  ;;  %v2128_v12 = vmul.f32 1.442695, %v2119_v3  ;;  %v2116_v25 = vmax.f32 %v4767_v4, %v3238_v36  ;;  %v2114_v19 = vmax.f32 %v4769_v7, %v2095_v37 }
 0x46a   : > { %3518 = vpow2.f32 %v2132_v1  ;;  %v2152_v46 = vmul.f32 1.442695, %v2143_v11  ;;  %v2117_v53 = vmax.f32 %v4771_v10, %v3239_v50  ;;  %v2115_v26 = vmax.f32 %v4774_v8, %v2098_v32 }
 0x46b   : > { %v2506_v40 = vunpack.c.l.b16 %v2483_v60  ;;  %3520 = vpow2.f32 %v2156_v43  ;;  %v2124_v24 = vsub.f32 %v4767_v4, %v2116_v25  ;;  %v2148_v30 = vsub.f32 %v3238_v36, %v2116_v25 }
 0x46c   : > { %v3511_v57 = vpop.eup %3510  ;;  %3522 = vpow2.f32 %v2128_v12  ;;  %v2122_v56 = vsub.f32 %v4769_v7, %v2114_v19  ;;  %v2146_v58 = vsub.f32 %v2095_v37, %v2114_v19  ;;  %v2125_v52 = vsub.f32 %v4771_v10, %v2117_v53 }
 0x46d   : > { %v3513_v54 = vpop.eup %3512  ;;  %v2518_v0 = vsel %vm2517_vm8, %v2506_v40, %v2516_v17  ;;  %3524 = vpow2.f32 %v2152_v46  ;;  %v2138_v51 = vmul.f32 1.442695, %v2124_v24  ;;  %v2162_v62 = vmul.f32 1.442695, %v2148_v30 }
 0x46e   : > { %v2520_v18 = vsel %vm2519_vm9, %v2507_v39, %v2518_v0  ;;  %v2168_v33 = vadd.f32 %v3513_v54, %v3511_v57  ;;  %v2134_v5 = vmul.f32 1.442695, %v2122_v56  ;;  %v2158_v63 = vmul.f32 1.442695, %v2146_v58  ;;  %v3475_v58 = vld [vmem:[#allocation17 + $0x8] sm:$0xff]  }
 0x46f   : > { %v4879_v4 = vsel %vm2521_vm10, %v2508_v9, %v2520_v18  ;;  %3526 = vpow2.f32 %v2138_v51  ;;  %v2149_v13 = vsub.f32 %v3239_v50, %v2117_v53  ;;  %v2123_v10 = vsub.f32 %v4774_v8, %v2115_v26  ;;  %v3474_v53 = vld [vmem:[#allocation17] sm:$0xff]  }
 0x470   : > { %v3515_v7 = vpop.eup %3514  ;;  %3528 = vrcp.f32 %v2168_v33  ;;  %v2147_v59 = vsub.f32 %v2098_v32, %v2115_v26  ;;  %v2140_v47 = vmul.f32 1.442695, %v2125_v52  ;;  %v5135_v52 = vmov 0.0  }
 0x471   : > { %v3517_v45 = vpop.eup %3516  ;;  %3530 = vpow2.f32 %v2162_v62  ;;  %v2164_v16 = vmul.f32 1.442695, %v2149_v13  ;;  %v2136_v23 = vmul.f32 1.442695, %v2123_v10  ;;  %v2523_v10 = vpack.c.b16 %v4879_v4, %v4879_v4 }
 0x472   : > { %v2166_v15 = vadd.f32 %v3517_v45, %v3515_v7  ;;  %3532 = vpow2.f32 %v2134_v5  ;;  %v2160_v6 = vmul.f32 1.442695, %v2147_v59  ;;  %v3476_v59 = vld [vmem:[%s5136_s10] sm:$0xff]  }
 0x473   : > { %3534 = vpow2.f32 %v2158_v63 }
 0x474   : > { %v3519_v29 = vpop.eup %3518  ;;  %3536 = vrcp.f32 %v2166_v15 }
 0x475   : > { %v3521_v21 = vpop.eup %3520  ;;  %3538 = vpow2.f32 %v2140_v47 }
 0x476   : > { %v3523_v34 = vpop.eup %3522  ;;  %v2169_v48 = vadd.f32 %v3521_v21, %v3519_v29  ;;  %3540 = vpow2.f32 %v2164_v16 }
 0x477   : > { %v3525_v14 = vpop.eup %3524  ;;  %3542 = vpow2.f32 %v2136_v23 }
 0x478   : > { %3544 = vrcp.f32 %v2169_v48  ;;  %v2167_v8 = vadd.f32 %v3525_v14, %v3523_v34 }
 0x479   : > { %v3527_v35 = vpop.eup %3526  ;;  %3546 = vpow2.f32 %v2160_v6  ;;  %v5138_v6 = vld [vmem:[#allocation32_spill] sm:$0xff] }
 0x47a   : > { %v3529_v36 = vpop.eup %3528  ;;  %3548 = vrcp.f32 %v2167_v8 }
 0x47b   : > { %v3531_v41 = vpop.eup %3530  ;;  %v2184_v27 = vmul.f32 %v3529_v36, %v3511_v57  ;;  %v2192_v55 = vmul.f32 %v3529_v36, %v3513_v54 }
 0x47c   : > { %v3533_v28 = vpop.eup %3532  ;;  %v2172_v37 = vadd.f32 %v3531_v41, %v3527_v35 }
 0x47d   : > { %v3535_v39 = vpop.eup %3534 }
 0x47e   : > { %v3537_v31 = vpop.eup %3536  ;;  %3550 = vrcp.f32 %v2172_v37  ;;  %v2170_v44 = vadd.f32 %v3535_v39, %v3533_v28 }
 0x47f   : > { %v3539_v49 = vpop.eup %3538  ;;  %v2182_v50 = vmul.f32 %v3537_v31, %v3515_v7  ;;  %v2190_v2 = vmul.f32 %v3537_v31, %v3517_v45  ;;  %v3477_v45 = vld [vmem:[%s5136_s10 + $0x8] sm:$0xff]   ;;  %s4022_s10 = smov [#allocation20]  }
 0x480   : > { %v3541_v20 = vpop.eup %3540  ;;  %3552 = vrcp.f32 %v2170_v44  ;;  %s3872_s11 = sshll.u32 %s4022_s10, 4  ;;  %s3873_s11 = int_to_ptr.vmem [resolvable:$false] %s3872_s11 }
 0x481   : > { %v3543_v42 = vpop.eup %3542  ;;  %v2173_v32 = vadd.f32 %v3541_v20, %v3539_v49  ;;  %s3874_s0 = scalar_lea.vmem %s3873_s11, 256  ;;  %p3875_p13 = scmp.lt.s32.totalorder %s2713_s19, %s3873_s11 }
 0x482   : > { %v3545_v9 = vpop.eup %3544  ;;  %p3876_p2 = scmp.lt.s32.totalorder %s3874_s0, %s3868_s7 }
 0x483   : > { %v3547_v22 = vpop.eup %3546  ;;  %v2185_v3 = vmul.f32 %v3545_v9, %v3519_v29  ;;  %v2193_v17 = vmul.f32 %v3545_v9, %v3521_v21  ;;  %3554 = vrcp.f32 %v2173_v32  ;;  %v5137_v21 = vld [vmem:[#allocation33_spill] sm:$0xff] }
 0x484   : > { %v3549_v1 = vpop.eup %3548  ;;  %v2171_v43 = vadd.f32 %v3547_v22, %v3543_v42  ;;  %p3877_p8 = por %p3876_p2, %p3875_p13 }
 0x485   : > { %v2280_v11 = vpack.c.bf16 %v2193_v17, %v2192_v55  ;;  %v2183_v60 = vmul.f32 %v3549_v1, %v3523_v34  ;;  %v2191_v12 = vmul.f32 %v3549_v1, %v3525_v14  ;;  %v2199_v25 = vpack.c.bf16 %v2185_v3, %v2184_v27 }
 0x486   : > { %3556 = vrcp.f32 %v2171_v43  ;;  %v5139_v34 = vrot.slane %v5137_v21, %v5138_v6  ;;  %p3878_p9 = pnand %p3877_p8, %p3871_p10 }
 0x487   : > { %v2198_v19 = vpack.c.bf16 %v2183_v60, %v2182_v50  ;;  %v2279_v46 = vpack.c.bf16 %v2191_v12, %v2190_v2 }
 0x488   : > { %v3551_v26 = vpop.eup %3550 }
 0x489   : > { %3242 = vmatprep.mubr.msk.bf16.mxu0 %vm1539_vm3, %v2198_v19  ;;  %3252 = vmatprep.mubr.msk.bf16.mxu1 %vm1539_vm3, %v2279_v46  ;;  %v2188_v40 = vmul.f32 %v3551_v26, %v3527_v35  ;;  %v2196_v24 = vmul.f32 %v3551_v26, %v3531_v41  ;;  %v5140_v41 = vld [vmem:[#allocation36_spill] sm:$0xff]  ;;  %v5146_v26 = vld [vmem:[#allocation39_spill] sm:$0xff] }
 0x48a   : > { %v3553_v30 = vpop.eup %3552  ;;  %3243 = vmatmul.mubr.msk.bf16.vlgmr.msra.gmra.mrb[28].mxu0 %vm1539_vm3, %v2199_v25  ;;  %3253 = vmatmul.mubr.msk.bf16.vlgmr.msra.gmra.mrb[40].mxu1 %vm1539_vm3, %v2280_v11  ;;  %v5144_v11 = vld [vmem:[#allocation35_spill] sm:$0xff] }
 0x48b   : > { %v2186_v57 = vmul.f32 %v3553_v30, %v3533_v28  ;;  %v2194_v56 = vmul.f32 %v3553_v30, %v3535_v39  ;;  %3261 = vmatpush3.bf16.msra.mxu0 %v3474_v53  ;;  %v5141_v39 = vld [vmem:[#allocation34_spill] sm:$0xff]  ;;  %v5145_v60 = vrot.slane %v5144_v11, %v5138_v6 }
 0x48c   : > { %3262 = vmatprep.subr.bf16.mxu0 %v5135_v52  ;;  %v5142_v31 = vrot.slane %v5141_v39, %v5138_v6 }
 0x48d   : > { %v3555_v54 = vpop.eup %3554 }
 0x48e   : > { %v2189_v0 = vmul.f32 %v3555_v54, %v3539_v49  ;;  %v2197_v51 = vmul.f32 %v3555_v54, %v3541_v20 }
 0x48f   : > { %3263 = vmatpush3.bf16.msra.mxu0 %v3475_v58  ;;  %v5147_v58 = vld [vmem:[#allocation37_spill] sm:$0xff] }
 0x490   : > { %v3557_v62 = vpop.eup %3556  ;;  %v2201_v18 = vpack.c.bf16 %v2189_v0, %v2188_v40  ;;  %v2282_v33 = vpack.c.bf16 %v2197_v51, %v2196_v24  ;;  %3268 = vmatprep.subr.bf16.mxu0 %v3476_v59 }
 0x491   : > { %v2187_v5 = vmul.f32 %v3557_v62, %v3543_v42  ;;  %v2195_v63 = vmul.f32 %v3557_v62, %v3547_v22  ;;  %v5143_v22 = vld [vmem:[#allocation38_spill] sm:$0xff] }
 0x493   : > { %v2200_v13 = vpack.c.bf16 %v2187_v5, %v2186_v57  ;;  %v2281_v7 = vpack.c.bf16 %v2195_v63, %v2194_v56 }
 0x495   : > { %3246 = vmatprep.mubr.msk.bf16.mxu0 %vm1539_vm3, %v2200_v13  ;;  %3256 = vmatprep.mubr.msk.bf16.mxu1 %vm1539_vm3, %v2281_v7 }
 0x496   : > { %3247 = vmatmul.mubr.msk.bf16.gmra.mrb[32].mxu0 %vm1539_vm3, %v2201_v18  ;;  %3257 = vmatmul.mubr.msk.bf16.gmra.mrb[44].mxu1 %vm1539_vm3, %v2282_v33  ;;  %v3045_v18 = vld [vmem:[#allocation19] ss:$0 sm:$0xff] }
 0x497   : > { %3264 = vmatprep.mubr.msk.bf16.mxu0 %vm4020_vm0, %v5135_v52  ;;  %v5148_v52 = vrot.slane %v5147_v58, %v5138_v6 }
 0x49e   : > { %3265 = vmatmul.mubr.msk.bf16.vlgmr.msra.gmra.mrb[36].mxu0 %vm897_vm1, %v2523_v10 }
 0x49f   : > { %3269 = vmatpush3.bf16.msra.mxu0 %v3476_v59 }
 0x4a0   : > { %3270 = vmatprep.subr.bf16.mxu0 %v3477_v45 }
 0x4a3   : > { %3271 = vmatpush3.bf16.msra.mxu0 %v3477_v45 }
 0x55d   : > { %v3244_v47 = vpop.f32.mrb[28].mxu0  ;;  %v3254_v15 = vpop.f32.mrb[40].mxu1 }
 0x55e   : > { %v2452_v16 = vmul.f32 %v3244_v47, %v4625_v38  ;;  %v2460_v4 = vmul.f32 %v3254_v15, %v4591_v61  ;;  %v2248_v23 = vpop.f32.mrb[29].mxu0  ;;  %v2329_v29 = vpop.f32.mrb[41].mxu1 }
 0x55f   : > { %v2450_v48 = vmul.f32 %v5139_v34, %v2248_v23  ;;  %v2458_v14 = vmul.f32 %v2329_v29, %v4591_v61  ;;  %v3245_v8 = vpop.f32.mrb[30].mxu0  ;;  %v3255_v35 = vpop.f32.mrb[42].mxu1 }
 0x560   : > { %v2468_v36 = vadd.f32 %v2460_v4, %v2452_v16  ;;  %v2453_v27 = vmul.f32 %v3245_v8, %v5140_v41  ;;  %v2461_v55 = vmul.f32 %v3255_v35, %v4591_v61  ;;  %v2251_v28 = vpop.f32.mrb[31].mxu0  ;;  %v2332_v37 = vpop.f32.mrb[43].mxu1 }
 0x561   : > { %v2466_v38 = vadd.f32 %v2458_v14, %v2450_v48  ;;  %v2451_v44 = vmul.f32 %v5142_v31, %v2251_v28  ;;  %v2459_v49 = vmul.f32 %v2332_v37, %v4591_v61 }
 0x562   : > { %v2469_v50 = vadd.f32 %v2461_v55, %v2453_v27 }
 0x563   : > { %v2467_v2 = vadd.f32 %v2459_v49, %v2451_v44 }
 0x564   : > { %v2584_v20 = vpack.c.bf16 %v2469_v50, %v2468_v36 }
 0x565   : > { %v2583_v42 = vpack.c.bf16 %v2467_v2, %v2466_v38 }
 0x567   : > { %3272 = vmatprep.mubr.msk.bf16.mxu0 %vm897_vm1, %v2583_v42 }
 0x568   : > { %3273 = vmatmul.mubr.msk.bf16.vlgmr.msra.gmra.mrb[40].mxu0 %vm897_vm1, %v2584_v20 }
 0x569   : > { %v3248_v32 = vpop.f32.mrb[32].mxu0  ;;  %v3258_v9 = vpop.f32.mrb[44].mxu1 }
 0x56a   : > { %v2456_v3 = vmul.f32 %v3248_v32, %v5143_v22  ;;  %v2464_v17 = vmul.f32 %v3258_v9, %v4591_v61  ;;  %v2264_v1 = vpop.f32.mrb[33].mxu0  ;;  %v2345_v43 = vpop.f32.mrb[45].mxu1 }
 0x56b   : > { %v2454_v12 = vmul.f32 %v5145_v60, %v2264_v1  ;;  %v2462_v25 = vmul.f32 %v2345_v43, %v4591_v61  ;;  %v3249_v19 = vpop.f32.mrb[34].mxu0  ;;  %v3259_v46 = vpop.f32.mrb[46].mxu1 }
 0x56c   : > { %v2472_v53 = vadd.f32 %v2464_v17, %v2456_v3  ;;  %v2457_v40 = vmul.f32 %v3249_v19, %v5146_v26  ;;  %v2465_v24 = vmul.f32 %v3259_v46, %v4591_v61  ;;  %v2267_v30 = vpop.f32.mrb[35].mxu0  ;;  %v2348_v57 = vpop.f32.mrb[47].mxu1 }
 0x56d   : > { %v2470_v56 = vadd.f32 %v2462_v25, %v2454_v12  ;;  %v2455_v54 = vmul.f32 %v5148_v52, %v2267_v30  ;;  %v2463_v0 = vmul.f32 %v2348_v57, %v4591_v61 }
 0x56e   : > { %v2473_v51 = vadd.f32 %v2465_v24, %v2457_v40 }
 0x56f   : > { %v2471_v62 = vadd.f32 %v2463_v0, %v2455_v54 }
 0x570   : > { %v2586_v33 = vpack.c.bf16 %v2473_v51, %v2472_v53 }
 0x571   : > { %v2585_v5 = vpack.c.bf16 %v2471_v62, %v2470_v56  ;;  %v2573_v63 = vpop.f32.mrb[36].mxu0 }
 0x572   : > { %v2574_v13 = vadd.f32 %v3045_v18, %v2573_v63  ;;  %v3266_v7 = vpop.f32.mrb[37].mxu0 }
 0x573   : > { %v2576_v10 = vpop.f32.mrb[38].mxu0  ;;  %3276 = vmatprep.mubr.msk.bf16.mxu0 %vm897_vm1, %v2585_v5 }
 0x574   : > { %v3267_v59 = vpop.f32.mrb[39].mxu0  ;;  %3277 = vmatmul.mubr.msk.bf16.gmra.mrb[44].mxu0 %vm897_vm1, %v2586_v33  ;;  %2683 = vst.msk [vmem:[%s844_s6] sm:$0xff] %vm897_vm1, %v2574_v13 }
 0x575   : > { %3881 = shalt.err (!%p3878_p9)
}
 0x576   : > { %s3882_s6 = scalar_lea.hbm %s4936_s1, 128  ;;  %s3886_s10 = scalar_lea.hbm %s5149_s29, 256 }
 0x577   : > { %p3883_p4 = scmp.ne.s32.totalorder %s4936_s1, %s3882_s6  ;;  %p3887_p7 = scmp.lt.u32.totalorder %s4936_s1, %s5149_s29 }
 0x578   : > { %p3888_p12 = scmp.lt.u32.totalorder %s3886_s10, %s3882_s6  ;;  %p3890_p0 = scmp.lt.u32.totalorder %s3882_s6, %s4936_s1 }
 0x579   : > { %p3884_p6 = pnand %p3883_p4, %p5150_p5 }
 0x57a   : > { %p3889_p11 = por %p3888_p12, %p3887_p7 }
 0x57b   : > { %p3885_p3 = pneg %p3884_p6 }
 0x57c   : > { %p3891_p1 = por %p3890_p0, %p3889_p11 }
 0x57e   : > { %p3892_p10 = pnand %p3891_p1, %p3885_p3 }
 0x580   : > { %3895 = shalt.err (!%p3892_p10)
}
 0x581   : > { %3325 = dma.vmem_to_hbm [thread:$0]  (%p5150_p5), %s2713_s19, 128, %s4936_s1, %s2693_s5  }
 0x582   : > { %s5151_s12 = sld [smem:[#allocation55_spill]]  ;;  %s5152_s18 = sshll.u32 %s4478_s22, 6 }
 0x583   : > { %s851_s6 = scalar_lea.vmem [#allocation21], %s5152_s18  ;;  %s5153_s27 = sld [smem:[#allocation57_spill]] }
 0x584   : > { %s2727_s5 = sshll.u32 %s851_s6, 4  ;;  %s4023_s7 = smov [#allocation21]   ;;  %s4972_s5 = int_to_ptr.vmem [resolvable:$true] %s2727_s5 }
 0x585   : > { %s3896_s11 = scalar_lea.vmem %s4972_s5, 1024  ;;  %s3900_s0 = sshll.u32 %s4023_s7, 4  ;;  %s3901_s0 = int_to_ptr.vmem [resolvable:$false] %s3900_s0 }
 0x586   : > { %p3897_p13 = scmp.ne.s32.totalorder %s4972_s5, %s3896_s11  ;;  %s3902_s18 = scalar_lea.vmem %s3901_s0, 2048 }
 0x587   : > { %p3903_p9 = scmp.lt.s32.totalorder %s4972_s5, %s3901_s0  ;;  %p3904_p4 = scmp.lt.s32.totalorder %s3902_s18, %s3896_s11 }
 0x588   : > { %v3049_v61 = vld [vmem:[%s5151_s12] ss:$0 sm:$0xff]  ;;  %s3064_s12 = sshll.u32 %s5115_s4, 10  ;;  %s2698_s4 = scalar_lea.sflag [#allocation22], %s4478_s22 }
 0x589   : > { %s5154_s10 = smov %s5153_s27  ;;  %s4970_s8 = scalar_lea.hbm %s5153_s27, %s3064_s12 }
 0x58a   : > { %p3898_p2 = pnand %p3897_p13, %p5150_p5  ;;  %p3905_p6 = por %p3904_p4, %p3903_p9 }
 0x58c   : > { %p3899_p8 = pneg %p3898_p2 }
 0x58e   : > { %p3906_p3 = pnand %p3905_p6, %p3899_p8 }
 0x63b   : > { %v3274_v45 = vpop.f32.mrb[40].mxu0 }
 0x63c   : > { %v2661_v47 = vadd.f32 %v3274_v45, %v3049_v61  ;;  %v2652_v15 = vpop.f32.mrb[41].mxu0 }
 0x63d   : > { %v2653_v16 = vadd.f32 %v3049_v61, %v2652_v15  ;;  %v3275_v4 = vpop.f32.mrb[42].mxu0 }
 0x63e   : > { %2686 = vst.msk [vmem:[%s851_s6 + $0x10] sm:$0xff] %vm897_vm1, %v2661_v47  ;;  %v2664_v23 = vadd.f32 %v3275_v4, %v3049_v61  ;;  %v2655_v29 = vpop.f32.mrb[43].mxu0 }
 0x63f   : > { %2684 = vst.msk [vmem:[%s851_s6] sm:$0xff] %vm897_vm1, %v2653_v16  ;;  %v2656_v21 = vadd.f32 %v3049_v61, %v2655_v29 }
 0x640   : > { %2687 = vst.msk [vmem:[%s851_s6 + $0x18] sm:$0xff] %vm897_vm1, %v2664_v23 }
 0x641   : > { %2685 = vst.msk [vmem:[%s851_s6 + $0x8] sm:$0xff] %vm897_vm1, %v2656_v21 }
 0x647   : > { %v3278_v6 = vpop.f32.mrb[44].mxu0 }
 0x648   : > { %v2677_v34 = vadd.f32 %v3278_v6, %v3049_v61  ;;  %v2668_v48 = vpop.f32.mrb[45].mxu0 }
 0x649   : > { %v2669_v14 = vadd.f32 %v3049_v61, %v2668_v48  ;;  %v3279_v8 = vpop.f32.mrb[46].mxu0 }
 0x64a   : > { %2690 = vst.msk [vmem:[%s851_s6 + $0x30] sm:$0xff] %vm897_vm1, %v2677_v34  ;;  %v2680_v35 = vadd.f32 %v3279_v8, %v3049_v61  ;;  %v2671_v36 = vpop.f32.mrb[47].mxu0 }
 0x64b   : > { %2688 = vst.msk [vmem:[%s851_s6 + $0x20] sm:$0xff] %vm897_vm1, %v2669_v14  ;;  %v2672_v41 = vadd.f32 %v3049_v61, %v2671_v36 }
 0x64c   : > { %2691 = vst.msk [vmem:[%s851_s6 + $0x38] sm:$0xff] %vm897_vm1, %v2680_v35 }
 0x64d   : > { %2689 = vst.msk [vmem:[%s851_s6 + $0x28] sm:$0xff] %vm897_vm1, %v2672_v41 }
 0x64e   : > { %3909 = shalt.err (!%p3906_p3)
}
 0x64f   : > { %s3910_s6 = scalar_lea.hbm %s4970_s8, 1024  ;;  %s3914_s19 = scalar_lea.hbm %s5154_s10, 2048 }
 0x650   : > { %p3911_p7 = scmp.ne.s32.totalorder %s4970_s8, %s3910_s6  ;;  %p3915_p0 = scmp.lt.u32.totalorder %s4970_s8, %s5154_s10 }
 0x651   : > { %p3916_p1 = scmp.lt.u32.totalorder %s3914_s19, %s3910_s6  ;;  %p3918_p13 = scmp.lt.u32.totalorder %s3910_s6, %s4970_s8 }
 0x652   : > { %p3912_p12 = pnand %p3911_p7, %p5150_p5 }
 0x653   : > { %p3917_p10 = por %p3916_p1, %p3915_p0 }
 0x654   : > { %p3913_p11 = pneg %p3912_p12 }
 0x655   : > { %p3919_p2 = por %p3918_p13, %p3917_p10 }
 0x657   : > { %p3920_p8 = pnand %p3919_p2, %p3913_p11 }
 0x659   : > { %3923 = shalt.err (!%p3920_p8)
}
 0x65a   : > { %s4024_s11 = smov 128   ;;  %s4025_s0 = smov 8  }
 0x65b   : > { %3326 = dma.vmem_to_hbm [thread:$0]  (%p5150_p5), %s4972_s5, 1024, %s4970_s8, %s2698_s4, %s4024_s11, %s4024_s11, %s4025_s0  }
 0x65c PF: > { %s2742_s18 = sand.u32 1, %s3982_s2   ;;  %p5155_p9 = scmp.ne.s32.totalorder %s5110_s23, 0 }
 0x65d   : > { %p5156_p4 = scmp.ge.s32.totalorder %s4002_s28, 2  ;;  %s2743_s6 = scalar_lea.sflag [#allocation4], %s2742_s18 }
 0x65f   : > { %p3365_p6 = pnand %p5156_p4, %p5155_p9 }
 0x661   : > { %3973 = dma.done.wait (!%p3365_p6), %s2743_s6, 128  }
 0x662   : > { %3975 = vsyncadd (!%p3365_p6), %s2743_s6, 4294967168  ;;  %s2752_s12 = scalar_lea.sflag [#allocation22], %s2742_s18 }
 0x663   : > { %3977 = dma.done.wait (!%p3365_p6), %s2752_s12, 1024  }
 0x664   : > { %3979 = vsyncadd (!%p3365_p6), %s2752_s12, 4294966272  ;;  %s46_s28 = sadd.s32 1, %s4002_s28   ;;  %s5157_s2 = smov %s3986_s25 }
 0x665   : > { %p43_p3 = scmp.ge.s32.totalorder %s46_s28, 4   ;;  %s5158_s25 = smov %s3990_s26 }
 0x666   : > { %s5159_s26 = smov %s4425_s9  ;;  %s5160_s27 = smov %s3998_s3 }
 0x667   : > { %s5161_s3 = smov %s5163_s14  ;;  %45 = sbr.rel (!%p43_p3) target bundleno = 32 (0x20), region = 205 }
 0x66e   :  { %2757 = vsyncpa [#allocation3], 1 }
 0x66f   :  { %2759 = vsyncpa [#allocation3 + $0x1], 1 }
 0x670   :  { %2760 = vsyncpa [#allocation6], 1 }
 0x671   :  { %2761 = vsyncpa [#allocation9], 1 }
 0x672   :  { %2762 = vsyncpa [#allocation12], 1 }
 0x673   :  { %2763 = vsyncpa [#allocation15], 1 }
 0x674   :  { %2764 = vsyncpa [#allocation18], 1 }
 0x675   :  { %2765 = vsyncpa [#allocation4], 1 }
 0x676   :  { %2767 = vsyncpa [#allocation4 + $0x1], 1 }
 0x677   :  { %2768 = vsyncpa [#allocation22], 1 }
 0x678   :  { %2770 = vsyncpa [#allocation22 + $0x1], 1 }

</bundles_post_ra>
